<compile_context>
chip_gen: v7x
topology: tpu7x:2x2x1
jax: 0.10.0
libtpu: 0.0.40
codegen_flags: <defaults>
</compile_context>

<pallas_src>
import jax
import jax.numpy as jnp
from jax.experimental import pallas as pl
from jax.experimental.pallas import tpu as pltpu

# ---------------- model hyperparameters (small, consistent with the module) ----------------
VOCAB = 40     # vocab_size
HID = 32       # hidden_size
LAYERS = 2     # num_layers
BATCH = 2
SEQ = 8

B_PAD = 8      # pad batch to a full sublane group
V_PAD = 128    # pad vocab to a full lane group -> unmasked, lane-dense logits store


def _lstm_cell(x, h, c, w_ih, w_hh, b):
    """PyTorch LSTMCell semantics, gate order [i, f, g, o] (pure-JAX reference only)."""
    gates = x @ w_ih + h @ w_hh + b
    H = h.shape[-1]
    i = jax.nn.sigmoid(gates[:, 0 * H:1 * H])
    f = jax.nn.sigmoid(gates[:, 1 * H:2 * H])
    g = jnp.tanh(gates[:, 2 * H:3 * H])
    o = jax.nn.sigmoid(gates[:, 3 * H:4 * H])
    c_new = f * c + i * g
    h_new = o * jnp.tanh(c_new)
    return h_new, c_new


def char_rnn_kernel(tok_ref, xproj_ref, whh0_ref, wih1_ref, whh1_ref, b1_ref,
                    wfc_ref, bfc_ref,
                    logits_ref, hN_ref, cN_ref,
                    xg_scr, h1_scr):
    B, T = tok_ref.shape
    H = whh0_ref.shape[0]
    G = whh0_ref.shape[1]          # 4*H
    BP = hN_ref.shape[1]

    # Post-tanh affine implementing sigmoid(a) = 0.5*tanh(a/2) + 0.5 on the i/f/o gate
    # lanes (their weight/bias columns are pre-scaled by 0.5 at init) and the identity
    # on the g-gate lanes.  One full-vreg tanh per layer instead of 4 small EUP passes.
    col = jax.lax.broadcasted_iota(jnp.int32, (1, G), 1)
    is_g = jnp.logical_and(col >= 2 * H, col < 3 * H)
    g_scale = jnp.where(is_g, 1.0, 0.5).astype(jnp.float32)
    g_shift = jnp.where(is_g, 0.0, 0.5).astype(jnp.float32)

    # ---- prologue: gather folded input-projection gates per token (t-major rows) ----
    xg_scr[...] = jnp.zeros_like(xg_scr)          # padded batch rows stay deterministic
    for t in range(T):
        for b in range(B):
            tok = tok_ref[b, t]                   # scalar read from SMEM
            xg_scr[pl.ds(t * BP + b, 1), :] = xproj_ref[tok]   # (1, 4H) lane-dense row copy

    def activate(gates, c):
        i = gates[:, 0 * H:1 * H]
        f = gates[:, 1 * H:2 * H]
        g = gates[:, 2 * H:3 * H]
        o = gates[:, 3 * H:4 * H]
        c_new = f * c + i * g
        h_new = o * jnp.tanh(c_new)
        return h_new, c_new

    zeros = jnp.zeros((BP, H), jnp.float32)       # hidden=None -> zero initial state

    def step(t, carry):
        h0, c0, h1, c1 = carry
        row = t * BP

        # Layer-1 recurrent half: depends only on the PREVIOUS h1, issued first so it
        # overlaps the layer-0 work (off the serial critical chain).
        g1h = jnp.dot(h1, whh1_ref[...], preferred_element_type=jnp.float32) + b1_ref[...]

        # ---- layer 0: only the recurrent matmul remains on the serial chain ----
        g0 = xg_scr[pl.ds(row, BP), :] + jnp.dot(
            h0, whh0_ref[...], preferred_element_type=jnp.float32)
        gates0 = jnp.tanh(g0) * g_scale + g_shift
        h0n, c0n = activate(gates0, c0)

        # ---- layer 1 ----
        # TODO(synk): training-mode inter-layer dropout omitted (eval-mode dropout is identity).
        g1 = jnp.dot(h0n, wih1_ref[...], preferred_element_type=jnp.float32) + g1h
        gates1 = jnp.tanh(g1) * g_scale + g_shift
        h1n, c1n = activate(gates1, c1)

        h1_scr[pl.ds(row, BP), :] = h1n           # stash for the deferred FC
        return h0n, c0n, h1n, c1n

    h0, c0, h1, c1 = jax.lax.fori_loop(
        0, T, step, (zeros, zeros, zeros, zeros), unroll=True)

    # ---- deferred FC: one lane-dense (T*BP, H) @ (H, V_PAD) matmul + bias ----
    lg = jnp.dot(h1_scr[...], wfc_ref[...],
                 preferred_element_type=jnp.float32) + bfc_ref[...]
    # Rewrite the B*T real rows in PyTorch's (b*T + t) order; all-static row copies,
    # so the wrapper only slices off the vocab lane padding.
    for b in range(B):
        for t in range(T):
            logits_ref[pl.ds(b * T + t, 1), :] = lg[t * BP + b:t * BP + b + 1, :]

    # TODO(synk): per-generation tuning (bf16 gates on v6e/v7x, MXU-resident recurrent
    # RHS via pltpu.matmul_push_rhs/matmul_acc_lhs) left out to keep one f32 path that
    # also runs on v5e.
    hN_ref[0] = h0
    hN_ref[1] = h1
    cN_ref[0] = c0
    cN_ref[1] = c1


def char_rnn_forward(tokens, params):
    """tokens: int32 (B, T). Returns (output (B*T, V), (h_n, c_n))."""
    B, T = tokens.shape
    H, V, L = HID, VOCAB, LAYERS
    BP, VP = B_PAD, V_PAD

    flops = (2 * T * BP * 3 * H * 4 * H        # 3 per-step recurrent matmuls
             + 2 * T * BP * H * VP)            # deferred fc
    transcendentals = T * 2 * (BP * 4 * H + BP * H)
    bytes_accessed = 4 * (V * 4 * H                       # folded embedding projection
                          + 3 * H * 4 * H + 4 * H         # lstm weights + bias
                          + H * VP + VP                   # fc weight + bias
                          + B * T                         # tokens
                          + B * T * VP + 2 * L * BP * H)  # outputs

    vmem = pl.BlockSpec(memory_space=pltpu.MemorySpace.VMEM)
    smem = pl.BlockSpec(memory_space=pltpu.MemorySpace.SMEM)

    logits_pad, h_n, c_n = pl.pallas_call(
        char_rnn_kernel,
        out_shape=(
            jax.ShapeDtypeStruct((B * T, VP), jnp.float32),
            jax.ShapeDtypeStruct((L, BP, H), jnp.float32),
            jax.ShapeDtypeStruct((L, BP, H), jnp.float32),
        ),
        in_specs=[smem, vmem, vmem, vmem, vmem, vmem, vmem, vmem],
        out_specs=(vmem, vmem, vmem),
        scratch_shapes=[
            pltpu.VMEM((T * BP, 4 * H), jnp.float32),   # gathered input-projection gates
            pltpu.VMEM((T * BP, H), jnp.float32),       # per-step h1 (deferred-FC input)
        ],
        cost_estimate=pl.CostEstimate(
            flops=flops,
            transcendentals=transcendentals,
            bytes_accessed=bytes_accessed),
    )(
        tokens,
        params["xproj"], params["whh0_s"],
        params["wih1_s"], params["whh1_s"], params["b1_s"],
        params["wfc_pad"], params["bfc_pad"],
    )

    output = logits_pad[:, :V]                           # drop vocab lane padding
    return output, (h_n[:, :B, :], c_n[:, :B, :])


# ---------------- pure-JAX reference (for correctness check) ----------------
def char_rnn_reference(tokens, params):
    B, T = tokens.shape
    H, V, L = HID, VOCAB, LAYERS
    emb = params["embedding"][tokens]                 # (B, T, H)

    def step(carry, x_t):
        h, c = carry  # (L, B, H) each
        h0, c0 = _lstm_cell(x_t, h[0], c[0],
                            params["wih0_t"], params["whh0_t"], params["b0"])
        h1, c1 = _lstm_cell(h0, h[1], c[1],
                            params["wih1_t"], params["whh1_t"], params["b1"])
        return (jnp.stack([h0, h1]), jnp.stack([c0, c1])), h1

    init = (jnp.zeros((L, B, H), jnp.float32), jnp.zeros((L, B, H), jnp.float32))
    (h_n, c_n), out_tm = jax.lax.scan(step, init, jnp.transpose(emb, (1, 0, 2)))
    rnn_out = jnp.transpose(out_tm, (1, 0, 2)).reshape(B * T, H)
    output = rnn_out @ params["wfc_t"] + params["bfc"]
    return output, (h_n, c_n)


def init_params(key):
    """Deterministic init mimicking PyTorch uniform(-1/sqrt(H), 1/sqrt(H))."""
    H, V = HID, VOCAB
    k = 1.0 / jnp.sqrt(jnp.float32(H))
    keys = jax.random.split(key, 12)
    u = lambda kk, shape: jax.random.uniform(kk, shape, jnp.float32, -k, k)

    emb = jax.random.normal(keys[0], (V, H), jnp.float32)  # nn.Embedding ~ N(0,1)

    # layer 0
    wih0 = u(keys[1], (4 * H, H)); whh0 = u(keys[2], (4 * H, H))
    bih0 = u(keys[3], (4 * H,));   bhh0 = u(keys[4], (4 * H,))
    # layer 1
    wih1 = u(keys[5], (4 * H, H)); whh1 = u(keys[6], (4 * H, H))
    bih1 = u(keys[7], (4 * H,));   bhh1 = u(keys[8], (4 * H,))
    # fc
    wfc = u(keys[9], (V, H));      bfc = u(keys[10], (V,))

    b0 = bih0 + bhh0
    b1 = bih1 + bhh1

    # sigmoid->tanh folding: scale the i/f/o gate columns by 0.5 (exact power-of-two
    # scaling; sigmoid(a) = 0.5*tanh(a/2) + 0.5), keep the g-gate columns unscaled.
    s = jnp.concatenate([jnp.full((H,), 0.5, jnp.float32),
                         jnp.full((H,), 0.5, jnp.float32),
                         jnp.ones((H,), jnp.float32),
                         jnp.full((H,), 0.5, jnp.float32)])

    wih0_s = wih0.T * s
    whh0_s = whh0.T * s
    wih1_s = wih1.T * s
    whh1_s = whh1.T * s
    b1_s = (b1 * s).reshape(1, 4 * H)

    # Fold the embedding with the (scaled) layer-0 input projection and bias so the
    # kernel only gathers per-token rows; (V, 1, 4H) puts the gather index on a major
    # (untiled) dim for a cheap dynamic row load.
    xproj = (emb @ wih0_s + b0 * s).reshape(V, 1, 4 * H)

    wfc_pad = jnp.zeros((H, V_PAD), jnp.float32).at[:, :V].set(wfc.T)
    bfc_pad = jnp.zeros((1, V_PAD), jnp.float32).at[:, :V].set(bfc)

    return {
        "embedding": emb,
        # kernel layout (gate-scaled / folded)
        "xproj": xproj,
        "whh0_s": whh0_s, "wih1_s": wih1_s, "whh1_s": whh1_s, "b1_s": b1_s,
        "wfc_pad": wfc_pad, "bfc_pad": bfc_pad,
        # reference layout (unscaled)
        "wih0_t": wih0.T, "whh0_t": whh0.T, "b0": b0.reshape(1, 4 * H),
        "wih1_t": wih1.T, "whh1_t": whh1.T, "b1": b1.reshape(1, 4 * H),
        "wfc_t": wfc.T, "bfc": bfc.reshape(1, V),
    }


if __name__ == "__main__":
    key = jax.random.PRNGKey(0)
    pkey, tkey = jax.random.split(key)
    params = init_params(pkey)
    tokens = jax.random.randint(tkey, (BATCH, SEQ), 0, VOCAB, dtype=jnp.int32)

    out, (h_n, c_n) = jax.jit(char_rnn_forward)(tokens, params)
    jax.block_until_ready((out, h_n, c_n))

    ref_out, (ref_h, ref_c) = char_rnn_reference(tokens, params)
    assert out.shape == (BATCH * SEQ, VOCAB)
    assert h_n.shape == (LAYERS, BATCH, HID) and c_n.shape == (LAYERS, BATCH, HID)
    assert jnp.allclose(out, ref_out, atol=1e-4, rtol=1e-4)
    assert jnp.allclose(h_n, ref_h, atol=1e-4, rtol=1e-4)
    assert jnp.allclose(c_n, ref_c, atol=1e-4, rtol=1e-4)

    print("KERNEL_OK")
</pallas_src>

<mosaic_0001>
module attributes {stable_mosaic.version = 11 : i64} {
  func.func @char_rnn_kernel(%arg0: memref<2x8xi32, #tpu.memory_space<smem>>, %arg1: memref<40x1x128xf32, #tpu.memory_space<vmem>>, %arg2: memref<32x128xf32, #tpu.memory_space<vmem>>, %arg3: memref<32x128xf32, #tpu.memory_space<vmem>>, %arg4: memref<32x128xf32, #tpu.memory_space<vmem>>, %arg5: memref<1x128xf32, #tpu.memory_space<vmem>>, %arg6: memref<32x128xf32, #tpu.memory_space<vmem>>, %arg7: memref<1x128xf32, #tpu.memory_space<vmem>>, %arg8: memref<16x128xf32, #tpu.memory_space<vmem>>, %arg9: memref<2x8x32xf32, #tpu.memory_space<vmem>>, %arg10: memref<2x8x32xf32, #tpu.memory_space<vmem>>, %arg11: memref<64x128xf32, #tpu.memory_space<vmem>>, %arg12: memref<64x32xf32, #tpu.memory_space<vmem>>) attributes {dimension_semantics = [], scalar_prefetch = 0 : i64, scratch_operands = 2 : i64, tpu.core_type = #tpu.core_type<tc>} {
    %0 = tpu.iota {dimensions = array<i32: 1>} : vector<1x128xi32>
    %c64_i32 = arith.constant 64 : i32
    %1 = vector.broadcast %c64_i32 : i32 to vector<1x128xi32>
    %2 = arith.cmpi sge, %0, %1 : vector<1x128xi32>
    %c96_i32 = arith.constant 96 : i32
    %3 = vector.broadcast %c96_i32 : i32 to vector<1x128xi32>
    %4 = arith.cmpi slt, %0, %3 : vector<1x128xi32>
    %5 = arith.andi %2, %4 : vector<1x128xi1>
    %cst = arith.constant 1.000000e+00 : f32
    %cst_0 = arith.constant 5.000000e-01 : f32
    %6 = vector.broadcast %cst : f32 to vector<1x128xf32>
    %7 = vector.broadcast %cst_0 : f32 to vector<1x128xf32>
    %8 = arith.select %5, %6, %7 : vector<1x128xi1>, vector<1x128xf32>
    %cst_1 = arith.constant 0.000000e+00 : f32
    %cst_2 = arith.constant 5.000000e-01 : f32
    %9 = vector.broadcast %cst_1 : f32 to vector<1x128xf32>
    %10 = vector.broadcast %cst_2 : f32 to vector<1x128xf32>
    %11 = arith.select %5, %9, %10 : vector<1x128xi1>, vector<1x128xf32>
    %cst_3 = arith.constant 0.000000e+00 : f32
    %12 = vector.broadcast %cst_3 : f32 to vector<64x128xf32>
    %c0 = arith.constant 0 : index
    %c0_4 = arith.constant 0 : index
    %13 = vector.load %arg11[%c0, %c0_4] : memref<64x128xf32, #tpu.memory_space<vmem>>, vector<64x128xf32>
    tpu.vector_store %arg11[%c0, %c0_4], %12 {strides = array<i32>} : memref<64x128xf32, #tpu.memory_space<vmem>>, vector<64x128xf32>,
    %c0_5 = arith.constant 0 : index
    %c0_6 = arith.constant 0 : index
    %14 = memref.load %arg0[%c0_5, %c0_6] : memref<2x8xi32, #tpu.memory_space<smem>>
    %15 = arith.index_cast %14 : i32 to index
    %c0_7 = arith.constant 0 : index
    %c0_8 = arith.constant 0 : index
    %16 = vector.load %arg1[%15, %c0_7, %c0_8] : memref<40x1x128xf32, #tpu.memory_space<vmem>>, vector<1x1x128xf32>
    %17 = vector.shape_cast %16 : vector<1x1x128xf32> to vector<1x128xf32>
    %c0_9 = arith.constant 0 : index
    %c0_10 = arith.constant 0 : index
    %18 = vector.load %arg11[%c0_9, %c0_10] : memref<64x128xf32, #tpu.memory_space<vmem>>, vector<1x128xf32>
    tpu.vector_store %arg11[%c0_9, %c0_10], %17 {strides = array<i32>} : memref<64x128xf32, #tpu.memory_space<vmem>>, vector<1x128xf32>,
    %c1 = arith.constant 1 : index
    %c0_11 = arith.constant 0 : index
    %19 = memref.load %arg0[%c1, %c0_11] : memref<2x8xi32, #tpu.memory_space<smem>>
    %20 = arith.index_cast %19 : i32 to index
    %c0_12 = arith.constant 0 : index
    %c0_13 = arith.constant 0 : index
    %21 = vector.load %arg1[%20, %c0_12, %c0_13] : memref<40x1x128xf32, #tpu.memory_space<vmem>>, vector<1x1x128xf32>
    %22 = vector.shape_cast %21 : vector<1x1x128xf32> to vector<1x128xf32>
    %c1_14 = arith.constant 1 : index
    %c0_15 = arith.constant 0 : index
    %23 = vector.load %arg11[%c1_14, %c0_15] : memref<64x128xf32, #tpu.memory_space<vmem>>, vector<1x128xf32>
    tpu.vector_store %arg11[%c1_14, %c0_15], %22 {strides = array<i32>} : memref<64x128xf32, #tpu.memory_space<vmem>>, vector<1x128xf32>,
    %c0_16 = arith.constant 0 : index
    %c1_17 = arith.constant 1 : index
    %24 = memref.load %arg0[%c0_16, %c1_17] : memref<2x8xi32, #tpu.memory_space<smem>>
    %25 = arith.index_cast %24 : i32 to index
    %c0_18 = arith.constant 0 : index
    %c0_19 = arith.constant 0 : index
    %26 = vector.load %arg1[%25, %c0_18, %c0_19] : memref<40x1x128xf32, #tpu.memory_space<vmem>>, vector<1x1x128xf32>
    %27 = vector.shape_cast %26 : vector<1x1x128xf32> to vector<1x128xf32>
    %c8 = arith.constant 8 : index
    %c0_20 = arith.constant 0 : index
    %28 = vector.load %arg11[%c8, %c0_20] : memref<64x128xf32, #tpu.memory_space<vmem>>, vector<1x128xf32>
    tpu.vector_store %arg11[%c8, %c0_20], %27 {strides = array<i32>} : memref<64x128xf32, #tpu.memory_space<vmem>>, vector<1x128xf32>,
    %c1_21 = arith.constant 1 : index
    %c1_22 = arith.constant 1 : index
    %29 = memref.load %arg0[%c1_21, %c1_22] : memref<2x8xi32, #tpu.memory_space<smem>>
    %30 = arith.index_cast %29 : i32 to index
    %c0_23 = arith.constant 0 : index
    %c0_24 = arith.constant 0 : index
    %31 = vector.load %arg1[%30, %c0_23, %c0_24] : memref<40x1x128xf32, #tpu.memory_space<vmem>>, vector<1x1x128xf32>
    %32 = vector.shape_cast %31 : vector<1x1x128xf32> to vector<1x128xf32>
    %c9 = arith.constant 9 : index
    %c0_25 = arith.constant 0 : index
    %33 = vector.load %arg11[%c9, %c0_25] : memref<64x128xf32, #tpu.memory_space<vmem>>, vector<1x128xf32>
    tpu.vector_store %arg11[%c9, %c0_25], %32 {strides = array<i32>} : memref<64x128xf32, #tpu.memory_space<vmem>>, vector<1x128xf32>,
    %c0_26 = arith.constant 0 : index
    %c2 = arith.constant 2 : index
    %34 = memref.load %arg0[%c0_26, %c2] : memref<2x8xi32, #tpu.memory_space<smem>>
    %35 = arith.index_cast %34 : i32 to index
    %c0_27 = arith.constant 0 : index
    %c0_28 = arith.constant 0 : index
    %36 = vector.load %arg1[%35, %c0_27, %c0_28] : memref<40x1x128xf32, #tpu.memory_space<vmem>>, vector<1x1x128xf32>
    %37 = vector.shape_cast %36 : vector<1x1x128xf32> to vector<1x128xf32>
    %c16 = arith.constant 16 : index
    %c0_29 = arith.constant 0 : index
    %38 = vector.load %arg11[%c16, %c0_29] : memref<64x128xf32, #tpu.memory_space<vmem>>, vector<1x128xf32>
    tpu.vector_store %arg11[%c16, %c0_29], %37 {strides = array<i32>} : memref<64x128xf32, #tpu.memory_space<vmem>>, vector<1x128xf32>,
    %c1_30 = arith.constant 1 : index
    %c2_31 = arith.constant 2 : index
    %39 = memref.load %arg0[%c1_30, %c2_31] : memref<2x8xi32, #tpu.memory_space<smem>>
    %40 = arith.index_cast %39 : i32 to index
    %c0_32 = arith.constant 0 : index
    %c0_33 = arith.constant 0 : index
    %41 = vector.load %arg1[%40, %c0_32, %c0_33] : memref<40x1x128xf32, #tpu.memory_space<vmem>>, vector<1x1x128xf32>
    %42 = vector.shape_cast %41 : vector<1x1x128xf32> to vector<1x128xf32>
    %c17 = arith.constant 17 : index
    %c0_34 = arith.constant 0 : index
    %43 = vector.load %arg11[%c17, %c0_34] : memref<64x128xf32, #tpu.memory_space<vmem>>, vector<1x128xf32>
    tpu.vector_store %arg11[%c17, %c0_34], %42 {strides = array<i32>} : memref<64x128xf32, #tpu.memory_space<vmem>>, vector<1x128xf32>,
    %c0_35 = arith.constant 0 : index
    %c3 = arith.constant 3 : index
    %44 = memref.load %arg0[%c0_35, %c3] : memref<2x8xi32, #tpu.memory_space<smem>>
    %45 = arith.index_cast %44 : i32 to index
    %c0_36 = arith.constant 0 : index
    %c0_37 = arith.constant 0 : index
    %46 = vector.load %arg1[%45, %c0_36, %c0_37] : memref<40x1x128xf32, #tpu.memory_space<vmem>>, vector<1x1x128xf32>
    %47 = vector.shape_cast %46 : vector<1x1x128xf32> to vector<1x128xf32>
    %c24 = arith.constant 24 : index
    %c0_38 = arith.constant 0 : index
    %48 = vector.load %arg11[%c24, %c0_38] : memref<64x128xf32, #tpu.memory_space<vmem>>, vector<1x128xf32>
    tpu.vector_store %arg11[%c24, %c0_38], %47 {strides = array<i32>} : memref<64x128xf32, #tpu.memory_space<vmem>>, vector<1x128xf32>,
    %c1_39 = arith.constant 1 : index
    %c3_40 = arith.constant 3 : index
    %49 = memref.load %arg0[%c1_39, %c3_40] : memref<2x8xi32, #tpu.memory_space<smem>>
    %50 = arith.index_cast %49 : i32 to index
    %c0_41 = arith.constant 0 : index
    %c0_42 = arith.constant 0 : index
    %51 = vector.load %arg1[%50, %c0_41, %c0_42] : memref<40x1x128xf32, #tpu.memory_space<vmem>>, vector<1x1x128xf32>
    %52 = vector.shape_cast %51 : vector<1x1x128xf32> to vector<1x128xf32>
    %c25 = arith.constant 25 : index
    %c0_43 = arith.constant 0 : index
    %53 = vector.load %arg11[%c25, %c0_43] : memref<64x128xf32, #tpu.memory_space<vmem>>, vector<1x128xf32>
    tpu.vector_store %arg11[%c25, %c0_43], %52 {strides = array<i32>} : memref<64x128xf32, #tpu.memory_space<vmem>>, vector<1x128xf32>,
    %c0_44 = arith.constant 0 : index
    %c4 = arith.constant 4 : index
    %54 = memref.load %arg0[%c0_44, %c4] : memref<2x8xi32, #tpu.memory_space<smem>>
    %55 = arith.index_cast %54 : i32 to index
    %c0_45 = arith.constant 0 : index
    %c0_46 = arith.constant 0 : index
    %56 = vector.load %arg1[%55, %c0_45, %c0_46] : memref<40x1x128xf32, #tpu.memory_space<vmem>>, vector<1x1x128xf32>
    %57 = vector.shape_cast %56 : vector<1x1x128xf32> to vector<1x128xf32>
    %c32 = arith.constant 32 : index
    %c0_47 = arith.constant 0 : index
    %58 = vector.load %arg11[%c32, %c0_47] : memref<64x128xf32, #tpu.memory_space<vmem>>, vector<1x128xf32>
    tpu.vector_store %arg11[%c32, %c0_47], %57 {strides = array<i32>} : memref<64x128xf32, #tpu.memory_space<vmem>>, vector<1x128xf32>,
    %c1_48 = arith.constant 1 : index
    %c4_49 = arith.constant 4 : index
    %59 = memref.load %arg0[%c1_48, %c4_49] : memref<2x8xi32, #tpu.memory_space<smem>>
    %60 = arith.index_cast %59 : i32 to index
    %c0_50 = arith.constant 0 : index
    %c0_51 = arith.constant 0 : index
    %61 = vector.load %arg1[%60, %c0_50, %c0_51] : memref<40x1x128xf32, #tpu.memory_space<vmem>>, vector<1x1x128xf32>
    %62 = vector.shape_cast %61 : vector<1x1x128xf32> to vector<1x128xf32>
    %c33 = arith.constant 33 : index
    %c0_52 = arith.constant 0 : index
    %63 = vector.load %arg11[%c33, %c0_52] : memref<64x128xf32, #tpu.memory_space<vmem>>, vector<1x128xf32>
    tpu.vector_store %arg11[%c33, %c0_52], %62 {strides = array<i32>} : memref<64x128xf32, #tpu.memory_space<vmem>>, vector<1x128xf32>,
    %c0_53 = arith.constant 0 : index
    %c5 = arith.constant 5 : index
    %64 = memref.load %arg0[%c0_53, %c5] : memref<2x8xi32, #tpu.memory_space<smem>>
    %65 = arith.index_cast %64 : i32 to index
    %c0_54 = arith.constant 0 : index
    %c0_55 = arith.constant 0 : index
    %66 = vector.load %arg1[%65, %c0_54, %c0_55] : memref<40x1x128xf32, #tpu.memory_space<vmem>>, vector<1x1x128xf32>
    %67 = vector.shape_cast %66 : vector<1x1x128xf32> to vector<1x128xf32>
    %c40 = arith.constant 40 : index
    %c0_56 = arith.constant 0 : index
    %68 = vector.load %arg11[%c40, %c0_56] : memref<64x128xf32, #tpu.memory_space<vmem>>, vector<1x128xf32>
    tpu.vector_store %arg11[%c40, %c0_56], %67 {strides = array<i32>} : memref<64x128xf32, #tpu.memory_space<vmem>>, vector<1x128xf32>,
    %c1_57 = arith.constant 1 : index
    %c5_58 = arith.constant 5 : index
    %69 = memref.load %arg0[%c1_57, %c5_58] : memref<2x8xi32, #tpu.memory_space<smem>>
    %70 = arith.index_cast %69 : i32 to index
    %c0_59 = arith.constant 0 : index
    %c0_60 = arith.constant 0 : index
    %71 = vector.load %arg1[%70, %c0_59, %c0_60] : memref<40x1x128xf32, #tpu.memory_space<vmem>>, vector<1x1x128xf32>
    %72 = vector.shape_cast %71 : vector<1x1x128xf32> to vector<1x128xf32>
    %c41 = arith.constant 41 : index
    %c0_61 = arith.constant 0 : index
    %73 = vector.load %arg11[%c41, %c0_61] : memref<64x128xf32, #tpu.memory_space<vmem>>, vector<1x128xf32>
    tpu.vector_store %arg11[%c41, %c0_61], %72 {strides = array<i32>} : memref<64x128xf32, #tpu.memory_space<vmem>>, vector<1x128xf32>,
    %c0_62 = arith.constant 0 : index
    %c6 = arith.constant 6 : index
    %74 = memref.load %arg0[%c0_62, %c6] : memref<2x8xi32, #tpu.memory_space<smem>>
    %75 = arith.index_cast %74 : i32 to index
    %c0_63 = arith.constant 0 : index
    %c0_64 = arith.constant 0 : index
    %76 = vector.load %arg1[%75, %c0_63, %c0_64] : memref<40x1x128xf32, #tpu.memory_space<vmem>>, vector<1x1x128xf32>
    %77 = vector.shape_cast %76 : vector<1x1x128xf32> to vector<1x128xf32>
    %c48 = arith.constant 48 : index
    %c0_65 = arith.constant 0 : index
    %78 = vector.load %arg11[%c48, %c0_65] : memref<64x128xf32, #tpu.memory_space<vmem>>, vector<1x128xf32>
    tpu.vector_store %arg11[%c48, %c0_65], %77 {strides = array<i32>} : memref<64x128xf32, #tpu.memory_space<vmem>>, vector<1x128xf32>,
    %c1_66 = arith.constant 1 : index
    %c6_67 = arith.constant 6 : index
    %79 = memref.load %arg0[%c1_66, %c6_67] : memref<2x8xi32, #tpu.memory_space<smem>>
    %80 = arith.index_cast %79 : i32 to index
    %c0_68 = arith.constant 0 : index
    %c0_69 = arith.constant 0 : index
    %81 = vector.load %arg1[%80, %c0_68, %c0_69] : memref<40x1x128xf32, #tpu.memory_space<vmem>>, vector<1x1x128xf32>
    %82 = vector.shape_cast %81 : vector<1x1x128xf32> to vector<1x128xf32>
    %c49 = arith.constant 49 : index
    %c0_70 = arith.constant 0 : index
    %83 = vector.load %arg11[%c49, %c0_70] : memref<64x128xf32, #tpu.memory_space<vmem>>, vector<1x128xf32>
    tpu.vector_store %arg11[%c49, %c0_70], %82 {strides = array<i32>} : memref<64x128xf32, #tpu.memory_space<vmem>>, vector<1x128xf32>,
    %c0_71 = arith.constant 0 : index
    %c7 = arith.constant 7 : index
    %84 = memref.load %arg0[%c0_71, %c7] : memref<2x8xi32, #tpu.memory_space<smem>>
    %85 = arith.index_cast %84 : i32 to index
    %c0_72 = arith.constant 0 : index
    %c0_73 = arith.constant 0 : index
    %86 = vector.load %arg1[%85, %c0_72, %c0_73] : memref<40x1x128xf32, #tpu.memory_space<vmem>>, vector<1x1x128xf32>
    %87 = vector.shape_cast %86 : vector<1x1x128xf32> to vector<1x128xf32>
    %c56 = arith.constant 56 : index
    %c0_74 = arith.constant 0 : index
    %88 = vector.load %arg11[%c56, %c0_74] : memref<64x128xf32, #tpu.memory_space<vmem>>, vector<1x128xf32>
    tpu.vector_store %arg11[%c56, %c0_74], %87 {strides = array<i32>} : memref<64x128xf32, #tpu.memory_space<vmem>>, vector<1x128xf32>,
    %c1_75 = arith.constant 1 : index
    %c7_76 = arith.constant 7 : index
    %89 = memref.load %arg0[%c1_75, %c7_76] : memref<2x8xi32, #tpu.memory_space<smem>>
    %90 = arith.index_cast %89 : i32 to index
    %c0_77 = arith.constant 0 : index
    %c0_78 = arith.constant 0 : index
    %91 = vector.load %arg1[%90, %c0_77, %c0_78] : memref<40x1x128xf32, #tpu.memory_space<vmem>>, vector<1x1x128xf32>
    %92 = vector.shape_cast %91 : vector<1x1x128xf32> to vector<1x128xf32>
    %c57 = arith.constant 57 : index
    %c0_79 = arith.constant 0 : index
    %93 = vector.load %arg11[%c57, %c0_79] : memref<64x128xf32, #tpu.memory_space<vmem>>, vector<1x128xf32>
    tpu.vector_store %arg11[%c57, %c0_79], %92 {strides = array<i32>} : memref<64x128xf32, #tpu.memory_space<vmem>>, vector<1x128xf32>,
    %cst_80 = arith.constant 0.000000e+00 : f32
    %94 = vector.broadcast %cst_80 : f32 to vector<8x32xf32>
    %c0_i32 = arith.constant 0 : i32
    %c8_i32 = arith.constant 8 : i32
    %95 = arith.muli %c0_i32, %c8_i32 : i32
    %c0_81 = arith.constant 0 : index
    %c0_82 = arith.constant 0 : index
    %96 = vector.load %arg4[%c0_81, %c0_82] : memref<32x128xf32, #tpu.memory_space<vmem>>, vector<32x128xf32>
    %cst_83 = arith.constant dense<0.000000e+00> : vector<8x128xf32>
    %97 = tpu.matmul %94, %96, %cst_83 {dimension_numbers = #tpu.dot_dimension_numbers<[1], [0], [0], [1], [0, 0, 1, 1], [], []>} : vector<8x32xf32>, vector<32x128xf32>, vector<8x128xf32> -> vector<8x128xf32>
    %c0_84 = arith.constant 0 : index
    %c0_85 = arith.constant 0 : index
    %98 = vector.load %arg5[%c0_84, %c0_85] : memref<1x128xf32, #tpu.memory_space<vmem>>, vector<1x128xf32>
    %99 = vector.broadcast %98 : vector<1x128xf32> to vector<8x128xf32>
    %100 = arith.addf %97, %99 : vector<8x128xf32>
    %101 = arith.index_cast %95 : i32 to index
    %c0_86 = arith.constant 0 : index
    %102 = vector.load %arg11[%101, %c0_86] : memref<64x128xf32, #tpu.memory_space<vmem>>, vector<8x128xf32>
    %c0_87 = arith.constant 0 : index
    %c0_88 = arith.constant 0 : index
    %103 = vector.load %arg2[%c0_87, %c0_88] : memref<32x128xf32, #tpu.memory_space<vmem>>, vector<32x128xf32>
    %cst_89 = arith.constant dense<0.000000e+00> : vector<8x128xf32>
    %104 = tpu.matmul %94, %103, %cst_89 {dimension_numbers = #tpu.dot_dimension_numbers<[1], [0], [0], [1], [0, 0, 1, 1], [], []>} : vector<8x32xf32>, vector<32x128xf32>, vector<8x128xf32> -> vector<8x128xf32>
    %105 = arith.addf %102, %104 : vector<8x128xf32>
    %106 = math.tanh %105 : vector<8x128xf32>
    %107 = vector.broadcast %8 : vector<1x128xf32> to vector<8x128xf32>
    %108 = arith.mulf %106, %107 : vector<8x128xf32>
    %109 = vector.broadcast %11 : vector<1x128xf32> to vector<8x128xf32>
    %110 = arith.addf %108, %109 : vector<8x128xf32>
    %111 = vector.extract_strided_slice %110 {offsets = [0, 0], sizes = [8, 32], strides = [1, 1]} : vector<8x128xf32> to vector<8x32xf32>
    %112 = vector.extract_strided_slice %110 {offsets = [0, 32], sizes = [8, 32], strides = [1, 1]} : vector<8x128xf32> to vector<8x32xf32>
    %113 = vector.extract_strided_slice %110 {offsets = [0, 64], sizes = [8, 32], strides = [1, 1]} : vector<8x128xf32> to vector<8x32xf32>
    %114 = vector.extract_strided_slice %110 {offsets = [0, 96], sizes = [8, 32], strides = [1, 1]} : vector<8x128xf32> to vector<8x32xf32>
    %115 = arith.mulf %112, %94 : vector<8x32xf32>
    %116 = arith.mulf %111, %113 : vector<8x32xf32>
    %117 = arith.addf %115, %116 : vector<8x32xf32>
    %118 = math.tanh %117 : vector<8x32xf32>
    %119 = arith.mulf %114, %118 : vector<8x32xf32>
    %c0_90 = arith.constant 0 : index
    %c0_91 = arith.constant 0 : index
    %120 = vector.load %arg3[%c0_90, %c0_91] : memref<32x128xf32, #tpu.memory_space<vmem>>, vector<32x128xf32>
    %cst_92 = arith.constant dense<0.000000e+00> : vector<8x128xf32>
    %121 = tpu.matmul %119, %120, %cst_92 {dimension_numbers = #tpu.dot_dimension_numbers<[1], [0], [0], [1], [0, 0, 1, 1], [], []>} : vector<8x32xf32>, vector<32x128xf32>, vector<8x128xf32> -> vector<8x128xf32>
    %122 = arith.addf %121, %100 : vector<8x128xf32>
    %123 = math.tanh %122 : vector<8x128xf32>
    %124 = vector.broadcast %8 : vector<1x128xf32> to vector<8x128xf32>
    %125 = arith.mulf %123, %124 : vector<8x128xf32>
    %126 = vector.broadcast %11 : vector<1x128xf32> to vector<8x128xf32>
    %127 = arith.addf %125, %126 : vector<8x128xf32>
    %128 = vector.extract_strided_slice %127 {offsets = [0, 0], sizes = [8, 32], strides = [1, 1]} : vector<8x128xf32> to vector<8x32xf32>
    %129 = vector.extract_strided_slice %127 {offsets = [0, 32], sizes = [8, 32], strides = [1, 1]} : vector<8x128xf32> to vector<8x32xf32>
    %130 = vector.extract_strided_slice %127 {offsets = [0, 64], sizes = [8, 32], strides = [1, 1]} : vector<8x128xf32> to vector<8x32xf32>
    %131 = vector.extract_strided_slice %127 {offsets = [0, 96], sizes = [8, 32], strides = [1, 1]} : vector<8x128xf32> to vector<8x32xf32>
    %132 = arith.mulf %129, %94 : vector<8x32xf32>
    %133 = arith.mulf %128, %130 : vector<8x32xf32>
    %134 = arith.addf %132, %133 : vector<8x32xf32>
    %135 = math.tanh %134 : vector<8x32xf32>
    %136 = arith.mulf %131, %135 : vector<8x32xf32>
    %137 = arith.index_cast %95 : i32 to index
    %c0_93 = arith.constant 0 : index
    %138 = vector.load %arg12[%137, %c0_93] : memref<64x32xf32, #tpu.memory_space<vmem>>, vector<8x32xf32>
    tpu.vector_store %arg12[%137, %c0_93], %136 {strides = array<i32>} : memref<64x32xf32, #tpu.memory_space<vmem>>, vector<8x32xf32>,
    %c1_i32 = arith.constant 1 : i32
    %c8_i32_94 = arith.constant 8 : i32
    %139 = arith.muli %c1_i32, %c8_i32_94 : i32
    %c0_95 = arith.constant 0 : index
    %c0_96 = arith.constant 0 : index
    %140 = vector.load %arg4[%c0_95, %c0_96] : memref<32x128xf32, #tpu.memory_space<vmem>>, vector<32x128xf32>
    %cst_97 = arith.constant dense<0.000000e+00> : vector<8x128xf32>
    %141 = tpu.matmul %136, %140, %cst_97 {dimension_numbers = #tpu.dot_dimension_numbers<[1], [0], [0], [1], [0, 0, 1, 1], [], []>} : vector<8x32xf32>, vector<32x128xf32>, vector<8x128xf32> -> vector<8x128xf32>
    %c0_98 = arith.constant 0 : index
    %c0_99 = arith.constant 0 : index
    %142 = vector.load %arg5[%c0_98, %c0_99] : memref<1x128xf32, #tpu.memory_space<vmem>>, vector<1x128xf32>
    %143 = vector.broadcast %142 : vector<1x128xf32> to vector<8x128xf32>
    %144 = arith.addf %141, %143 : vector<8x128xf32>
    %145 = arith.index_cast %139 : i32 to index
    %c0_100 = arith.constant 0 : index
    %146 = vector.load %arg11[%145, %c0_100] : memref<64x128xf32, #tpu.memory_space<vmem>>, vector<8x128xf32>
    %c0_101 = arith.constant 0 : index
    %c0_102 = arith.constant 0 : index
    %147 = vector.load %arg2[%c0_101, %c0_102] : memref<32x128xf32, #tpu.memory_space<vmem>>, vector<32x128xf32>
    %cst_103 = arith.constant dense<0.000000e+00> : vector<8x128xf32>
    %148 = tpu.matmul %119, %147, %cst_103 {dimension_numbers = #tpu.dot_dimension_numbers<[1], [0], [0], [1], [0, 0, 1, 1], [], []>} : vector<8x32xf32>, vector<32x128xf32>, vector<8x128xf32> -> vector<8x128xf32>
    %149 = arith.addf %146, %148 : vector<8x128xf32>
    %150 = math.tanh %149 : vector<8x128xf32>
    %151 = vector.broadcast %8 : vector<1x128xf32> to vector<8x128xf32>
    %152 = arith.mulf %150, %151 : vector<8x128xf32>
    %153 = vector.broadcast %11 : vector<1x128xf32> to vector<8x128xf32>
    %154 = arith.addf %152, %153 : vector<8x128xf32>
    %155 = vector.extract_strided_slice %154 {offsets = [0, 0], sizes = [8, 32], strides = [1, 1]} : vector<8x128xf32> to vector<8x32xf32>
    %156 = vector.extract_strided_slice %154 {offsets = [0, 32], sizes = [8, 32], strides = [1, 1]} : vector<8x128xf32> to vector<8x32xf32>
    %157 = vector.extract_strided_slice %154 {offsets = [0, 64], sizes = [8, 32], strides = [1, 1]} : vector<8x128xf32> to vector<8x32xf32>
    %158 = vector.extract_strided_slice %154 {offsets = [0, 96], sizes = [8, 32], strides = [1, 1]} : vector<8x128xf32> to vector<8x32xf32>
    %159 = arith.mulf %156, %117 : vector<8x32xf32>
    %160 = arith.mulf %155, %157 : vector<8x32xf32>
    %161 = arith.addf %159, %160 : vector<8x32xf32>
    %162 = math.tanh %161 : vector<8x32xf32>
    %163 = arith.mulf %158, %162 : vector<8x32xf32>
    %c0_104 = arith.constant 0 : index
    %c0_105 = arith.constant 0 : index
    %164 = vector.load %arg3[%c0_104, %c0_105] : memref<32x128xf32, #tpu.memory_space<vmem>>, vector<32x128xf32>
    %cst_106 = arith.constant dense<0.000000e+00> : vector<8x128xf32>
    %165 = tpu.matmul %163, %164, %cst_106 {dimension_numbers = #tpu.dot_dimension_numbers<[1], [0], [0], [1], [0, 0, 1, 1], [], []>} : vector<8x32xf32>, vector<32x128xf32>, vector<8x128xf32> -> vector<8x128xf32>
    %166 = arith.addf %165, %144 : vector<8x128xf32>
    %167 = math.tanh %166 : vector<8x128xf32>
    %168 = vector.broadcast %8 : vector<1x128xf32> to vector<8x128xf32>
    %169 = arith.mulf %167, %168 : vector<8x128xf32>
    %170 = vector.broadcast %11 : vector<1x128xf32> to vector<8x128xf32>
    %171 = arith.addf %169, %170 : vector<8x128xf32>
    %172 = vector.extract_strided_slice %171 {offsets = [0, 0], sizes = [8, 32], strides = [1, 1]} : vector<8x128xf32> to vector<8x32xf32>
    %173 = vector.extract_strided_slice %171 {offsets = [0, 32], sizes = [8, 32], strides = [1, 1]} : vector<8x128xf32> to vector<8x32xf32>
    %174 = vector.extract_strided_slice %171 {offsets = [0, 64], sizes = [8, 32], strides = [1, 1]} : vector<8x128xf32> to vector<8x32xf32>
    %175 = vector.extract_strided_slice %171 {offsets = [0, 96], sizes = [8, 32], strides = [1, 1]} : vector<8x128xf32> to vector<8x32xf32>
    %176 = arith.mulf %173, %134 : vector<8x32xf32>
    %177 = arith.mulf %172, %174 : vector<8x32xf32>
    %178 = arith.addf %176, %177 : vector<8x32xf32>
    %179 = math.tanh %178 : vector<8x32xf32>
    %180 = arith.mulf %175, %179 : vector<8x32xf32>
    %181 = arith.index_cast %139 : i32 to index
    %c0_107 = arith.constant 0 : index
    %182 = vector.load %arg12[%181, %c0_107] : memref<64x32xf32, #tpu.memory_space<vmem>>, vector<8x32xf32>
    tpu.vector_store %arg12[%181, %c0_107], %180 {strides = array<i32>} : memref<64x32xf32, #tpu.memory_space<vmem>>, vector<8x32xf32>,
    %c2_i32 = arith.constant 2 : i32
    %c8_i32_108 = arith.constant 8 : i32
    %183 = arith.muli %c2_i32, %c8_i32_108 : i32
    %c0_109 = arith.constant 0 : index
    %c0_110 = arith.constant 0 : index
    %184 = vector.load %arg4[%c0_109, %c0_110] : memref<32x128xf32, #tpu.memory_space<vmem>>, vector<32x128xf32>
    %cst_111 = arith.constant dense<0.000000e+00> : vector<8x128xf32>
    %185 = tpu.matmul %180, %184, %cst_111 {dimension_numbers = #tpu.dot_dimension_numbers<[1], [0], [0], [1], [0, 0, 1, 1], [], []>} : vector<8x32xf32>, vector<32x128xf32>, vector<8x128xf32> -> vector<8x128xf32>
    %c0_112 = arith.constant 0 : index
    %c0_113 = arith.constant 0 : index
    %186 = vector.load %arg5[%c0_112, %c0_113] : memref<1x128xf32, #tpu.memory_space<vmem>>, vector<1x128xf32>
    %187 = vector.broadcast %186 : vector<1x128xf32> to vector<8x128xf32>
    %188 = arith.addf %185, %187 : vector<8x128xf32>
    %189 = arith.index_cast %183 : i32 to index
    %c0_114 = arith.constant 0 : index
    %190 = vector.load %arg11[%189, %c0_114] : memref<64x128xf32, #tpu.memory_space<vmem>>, vector<8x128xf32>
    %c0_115 = arith.constant 0 : index
    %c0_116 = arith.constant 0 : index
    %191 = vector.load %arg2[%c0_115, %c0_116] : memref<32x128xf32, #tpu.memory_space<vmem>>, vector<32x128xf32>
    %cst_117 = arith.constant dense<0.000000e+00> : vector<8x128xf32>
    %192 = tpu.matmul %163, %191, %cst_117 {dimension_numbers = #tpu.dot_dimension_numbers<[1], [0], [0], [1], [0, 0, 1, 1], [], []>} : vector<8x32xf32>, vector<32x128xf32>, vector<8x128xf32> -> vector<8x128xf32>
    %193 = arith.addf %190, %192 : vector<8x128xf32>
    %194 = math.tanh %193 : vector<8x128xf32>
    %195 = vector.broadcast %8 : vector<1x128xf32> to vector<8x128xf32>
    %196 = arith.mulf %194, %195 : vector<8x128xf32>
    %197 = vector.broadcast %11 : vector<1x128xf32> to vector<8x128xf32>
    %198 = arith.addf %196, %197 : vector<8x128xf32>
    %199 = vector.extract_strided_slice %198 {offsets = [0, 0], sizes = [8, 32], strides = [1, 1]} : vector<8x128xf32> to vector<8x32xf32>
    %200 = vector.extract_strided_slice %198 {offsets = [0, 32], sizes = [8, 32], strides = [1, 1]} : vector<8x128xf32> to vector<8x32xf32>
    %201 = vector.extract_strided_slice %198 {offsets = [0, 64], sizes = [8, 32], strides = [1, 1]} : vector<8x128xf32> to vector<8x32xf32>
    %202 = vector.extract_strided_slice %198 {offsets = [0, 96], sizes = [8, 32], strides = [1, 1]} : vector<8x128xf32> to vector<8x32xf32>
    %203 = arith.mulf %200, %161 : vector<8x32xf32>
    %204 = arith.mulf %199, %201 : vector<8x32xf32>
    %205 = arith.addf %203, %204 : vector<8x32xf32>
    %206 = math.tanh %205 : vector<8x32xf32>
    %207 = arith.mulf %202, %206 : vector<8x32xf32>
    %c0_118 = arith.constant 0 : index
    %c0_119 = arith.constant 0 : index
    %208 = vector.load %arg3[%c0_118, %c0_119] : memref<32x128xf32, #tpu.memory_space<vmem>>, vector<32x128xf32>
    %cst_120 = arith.constant dense<0.000000e+00> : vector<8x128xf32>
    %209 = tpu.matmul %207, %208, %cst_120 {dimension_numbers = #tpu.dot_dimension_numbers<[1], [0], [0], [1], [0, 0, 1, 1], [], []>} : vector<8x32xf32>, vector<32x128xf32>, vector<8x128xf32> -> vector<8x128xf32>
    %210 = arith.addf %209, %188 : vector<8x128xf32>
    %211 = math.tanh %210 : vector<8x128xf32>
    %212 = vector.broadcast %8 : vector<1x128xf32> to vector<8x128xf32>
    %213 = arith.mulf %211, %212 : vector<8x128xf32>
    %214 = vector.broadcast %11 : vector<1x128xf32> to vector<8x128xf32>
    %215 = arith.addf %213, %214 : vector<8x128xf32>
    %216 = vector.extract_strided_slice %215 {offsets = [0, 0], sizes = [8, 32], strides = [1, 1]} : vector<8x128xf32> to vector<8x32xf32>
    %217 = vector.extract_strided_slice %215 {offsets = [0, 32], sizes = [8, 32], strides = [1, 1]} : vector<8x128xf32> to vector<8x32xf32>
    %218 = vector.extract_strided_slice %215 {offsets = [0, 64], sizes = [8, 32], strides = [1, 1]} : vector<8x128xf32> to vector<8x32xf32>
    %219 = vector.extract_strided_slice %215 {offsets = [0, 96], sizes = [8, 32], strides = [1, 1]} : vector<8x128xf32> to vector<8x32xf32>
    %220 = arith.mulf %217, %178 : vector<8x32xf32>
    %221 = arith.mulf %216, %218 : vector<8x32xf32>
    %222 = arith.addf %220, %221 : vector<8x32xf32>
    %223 = math.tanh %222 : vector<8x32xf32>
    %224 = arith.mulf %219, %223 : vector<8x32xf32>
    %225 = arith.index_cast %183 : i32 to index
    %c0_121 = arith.constant 0 : index
    %226 = vector.load %arg12[%225, %c0_121] : memref<64x32xf32, #tpu.memory_space<vmem>>, vector<8x32xf32>
    tpu.vector_store %arg12[%225, %c0_121], %224 {strides = array<i32>} : memref<64x32xf32, #tpu.memory_space<vmem>>, vector<8x32xf32>,
    %c3_i32 = arith.constant 3 : i32
    %c8_i32_122 = arith.constant 8 : i32
    %227 = arith.muli %c3_i32, %c8_i32_122 : i32
    %c0_123 = arith.constant 0 : index
    %c0_124 = arith.constant 0 : index
    %228 = vector.load %arg4[%c0_123, %c0_124] : memref<32x128xf32, #tpu.memory_space<vmem>>, vector<32x128xf32>
    %cst_125 = arith.constant dense<0.000000e+00> : vector<8x128xf32>
    %229 = tpu.matmul %224, %228, %cst_125 {dimension_numbers = #tpu.dot_dimension_numbers<[1], [0], [0], [1], [0, 0, 1, 1], [], []>} : vector<8x32xf32>, vector<32x128xf32>, vector<8x128xf32> -> vector<8x128xf32>
    %c0_126 = arith.constant 0 : index
    %c0_127 = arith.constant 0 : index
    %230 = vector.load %arg5[%c0_126, %c0_127] : memref<1x128xf32, #tpu.memory_space<vmem>>, vector<1x128xf32>
    %231 = vector.broadcast %230 : vector<1x128xf32> to vector<8x128xf32>
    %232 = arith.addf %229, %231 : vector<8x128xf32>
    %233 = arith.index_cast %227 : i32 to index
    %c0_128 = arith.constant 0 : index
    %234 = vector.load %arg11[%233, %c0_128] : memref<64x128xf32, #tpu.memory_space<vmem>>, vector<8x128xf32>
    %c0_129 = arith.constant 0 : index
    %c0_130 = arith.constant 0 : index
    %235 = vector.load %arg2[%c0_129, %c0_130] : memref<32x128xf32, #tpu.memory_space<vmem>>, vector<32x128xf32>
    %cst_131 = arith.constant dense<0.000000e+00> : vector<8x128xf32>
    %236 = tpu.matmul %207, %235, %cst_131 {dimension_numbers = #tpu.dot_dimension_numbers<[1], [0], [0], [1], [0, 0, 1, 1], [], []>} : vector<8x32xf32>, vector<32x128xf32>, vector<8x128xf32> -> vector<8x128xf32>
    %237 = arith.addf %234, %236 : vector<8x128xf32>
    %238 = math.tanh %237 : vector<8x128xf32>
    %239 = vector.broadcast %8 : vector<1x128xf32> to vector<8x128xf32>
    %240 = arith.mulf %238, %239 : vector<8x128xf32>
    %241 = vector.broadcast %11 : vector<1x128xf32> to vector<8x128xf32>
    %242 = arith.addf %240, %241 : vector<8x128xf32>
    %243 = vector.extract_strided_slice %242 {offsets = [0, 0], sizes = [8, 32], strides = [1, 1]} : vector<8x128xf32> to vector<8x32xf32>
    %244 = vector.extract_strided_slice %242 {offsets = [0, 32], sizes = [8, 32], strides = [1, 1]} : vector<8x128xf32> to vector<8x32xf32>
    %245 = vector.extract_strided_slice %242 {offsets = [0, 64], sizes = [8, 32], strides = [1, 1]} : vector<8x128xf32> to vector<8x32xf32>
    %246 = vector.extract_strided_slice %242 {offsets = [0, 96], sizes = [8, 32], strides = [1, 1]} : vector<8x128xf32> to vector<8x32xf32>
    %247 = arith.mulf %244, %205 : vector<8x32xf32>
    %248 = arith.mulf %243, %245 : vector<8x32xf32>
    %249 = arith.addf %247, %248 : vector<8x32xf32>
    %250 = math.tanh %249 : vector<8x32xf32>
    %251 = arith.mulf %246, %250 : vector<8x32xf32>
    %c0_132 = arith.constant 0 : index
    %c0_133 = arith.constant 0 : index
    %252 = vector.load %arg3[%c0_132, %c0_133] : memref<32x128xf32, #tpu.memory_space<vmem>>, vector<32x128xf32>
    %cst_134 = arith.constant dense<0.000000e+00> : vector<8x128xf32>
    %253 = tpu.matmul %251, %252, %cst_134 {dimension_numbers = #tpu.dot_dimension_numbers<[1], [0], [0], [1], [0, 0, 1, 1], [], []>} : vector<8x32xf32>, vector<32x128xf32>, vector<8x128xf32> -> vector<8x128xf32>
    %254 = arith.addf %253, %232 : vector<8x128xf32>
    %255 = math.tanh %254 : vector<8x128xf32>
    %256 = vector.broadcast %8 : vector<1x128xf32> to vector<8x128xf32>
    %257 = arith.mulf %255, %256 : vector<8x128xf32>
    %258 = vector.broadcast %11 : vector<1x128xf32> to vector<8x128xf32>
    %259 = arith.addf %257, %258 : vector<8x128xf32>
    %260 = vector.extract_strided_slice %259 {offsets = [0, 0], sizes = [8, 32], strides = [1, 1]} : vector<8x128xf32> to vector<8x32xf32>
    %261 = vector.extract_strided_slice %259 {offsets = [0, 32], sizes = [8, 32], strides = [1, 1]} : vector<8x128xf32> to vector<8x32xf32>
    %262 = vector.extract_strided_slice %259 {offsets = [0, 64], sizes = [8, 32], strides = [1, 1]} : vector<8x128xf32> to vector<8x32xf32>
    %263 = vector.extract_strided_slice %259 {offsets = [0, 96], sizes = [8, 32], strides = [1, 1]} : vector<8x128xf32> to vector<8x32xf32>
    %264 = arith.mulf %261, %222 : vector<8x32xf32>
    %265 = arith.mulf %260, %262 : vector<8x32xf32>
    %266 = arith.addf %264, %265 : vector<8x32xf32>
    %267 = math.tanh %266 : vector<8x32xf32>
    %268 = arith.mulf %263, %267 : vector<8x32xf32>
    %269 = arith.index_cast %227 : i32 to index
    %c0_135 = arith.constant 0 : index
    %270 = vector.load %arg12[%269, %c0_135] : memref<64x32xf32, #tpu.memory_space<vmem>>, vector<8x32xf32>
    tpu.vector_store %arg12[%269, %c0_135], %268 {strides = array<i32>} : memref<64x32xf32, #tpu.memory_space<vmem>>, vector<8x32xf32>,
    %c4_i32 = arith.constant 4 : i32
    %c8_i32_136 = arith.constant 8 : i32
    %271 = arith.muli %c4_i32, %c8_i32_136 : i32
    %c0_137 = arith.constant 0 : index
    %c0_138 = arith.constant 0 : index
    %272 = vector.load %arg4[%c0_137, %c0_138] : memref<32x128xf32, #tpu.memory_space<vmem>>, vector<32x128xf32>
    %cst_139 = arith.constant dense<0.000000e+00> : vector<8x128xf32>
    %273 = tpu.matmul %268, %272, %cst_139 {dimension_numbers = #tpu.dot_dimension_numbers<[1], [0], [0], [1], [0, 0, 1, 1], [], []>} : vector<8x32xf32>, vector<32x128xf32>, vector<8x128xf32> -> vector<8x128xf32>
    %c0_140 = arith.constant 0 : index
    %c0_141 = arith.constant 0 : index
    %274 = vector.load %arg5[%c0_140, %c0_141] : memref<1x128xf32, #tpu.memory_space<vmem>>, vector<1x128xf32>
    %275 = vector.broadcast %274 : vector<1x128xf32> to vector<8x128xf32>
    %276 = arith.addf %273, %275 : vector<8x128xf32>
    %277 = arith.index_cast %271 : i32 to index
    %c0_142 = arith.constant 0 : index
    %278 = vector.load %arg11[%277, %c0_142] : memref<64x128xf32, #tpu.memory_space<vmem>>, vector<8x128xf32>
    %c0_143 = arith.constant 0 : index
    %c0_144 = arith.constant 0 : index
    %279 = vector.load %arg2[%c0_143, %c0_144] : memref<32x128xf32, #tpu.memory_space<vmem>>, vector<32x128xf32>
    %cst_145 = arith.constant dense<0.000000e+00> : vector<8x128xf32>
    %280 = tpu.matmul %251, %279, %cst_145 {dimension_numbers = #tpu.dot_dimension_numbers<[1], [0], [0], [1], [0, 0, 1, 1], [], []>} : vector<8x32xf32>, vector<32x128xf32>, vector<8x128xf32> -> vector<8x128xf32>
    %281 = arith.addf %278, %280 : vector<8x128xf32>
    %282 = math.tanh %281 : vector<8x128xf32>
    %283 = vector.broadcast %8 : vector<1x128xf32> to vector<8x128xf32>
    %284 = arith.mulf %282, %283 : vector<8x128xf32>
    %285 = vector.broadcast %11 : vector<1x128xf32> to vector<8x128xf32>
    %286 = arith.addf %284, %285 : vector<8x128xf32>
    %287 = vector.extract_strided_slice %286 {offsets = [0, 0], sizes = [8, 32], strides = [1, 1]} : vector<8x128xf32> to vector<8x32xf32>
    %288 = vector.extract_strided_slice %286 {offsets = [0, 32], sizes = [8, 32], strides = [1, 1]} : vector<8x128xf32> to vector<8x32xf32>
    %289 = vector.extract_strided_slice %286 {offsets = [0, 64], sizes = [8, 32], strides = [1, 1]} : vector<8x128xf32> to vector<8x32xf32>
    %290 = vector.extract_strided_slice %286 {offsets = [0, 96], sizes = [8, 32], strides = [1, 1]} : vector<8x128xf32> to vector<8x32xf32>
    %291 = arith.mulf %288, %249 : vector<8x32xf32>
    %292 = arith.mulf %287, %289 : vector<8x32xf32>
    %293 = arith.addf %291, %292 : vector<8x32xf32>
    %294 = math.tanh %293 : vector<8x32xf32>
    %295 = arith.mulf %290, %294 : vector<8x32xf32>
    %c0_146 = arith.constant 0 : index
    %c0_147 = arith.constant 0 : index
    %296 = vector.load %arg3[%c0_146, %c0_147] : memref<32x128xf32, #tpu.memory_space<vmem>>, vector<32x128xf32>
    %cst_148 = arith.constant dense<0.000000e+00> : vector<8x128xf32>
    %297 = tpu.matmul %295, %296, %cst_148 {dimension_numbers = #tpu.dot_dimension_numbers<[1], [0], [0], [1], [0, 0, 1, 1], [], []>} : vector<8x32xf32>, vector<32x128xf32>, vector<8x128xf32> -> vector<8x128xf32>
    %298 = arith.addf %297, %276 : vector<8x128xf32>
    %299 = math.tanh %298 : vector<8x128xf32>
    %300 = vector.broadcast %8 : vector<1x128xf32> to vector<8x128xf32>
    %301 = arith.mulf %299, %300 : vector<8x128xf32>
    %302 = vector.broadcast %11 : vector<1x128xf32> to vector<8x128xf32>
    %303 = arith.addf %301, %302 : vector<8x128xf32>
    %304 = vector.extract_strided_slice %303 {offsets = [0, 0], sizes = [8, 32], strides = [1, 1]} : vector<8x128xf32> to vector<8x32xf32>
    %305 = vector.extract_strided_slice %303 {offsets = [0, 32], sizes = [8, 32], strides = [1, 1]} : vector<8x128xf32> to vector<8x32xf32>
    %306 = vector.extract_strided_slice %303 {offsets = [0, 64], sizes = [8, 32], strides = [1, 1]} : vector<8x128xf32> to vector<8x32xf32>
    %307 = vector.extract_strided_slice %303 {offsets = [0, 96], sizes = [8, 32], strides = [1, 1]} : vector<8x128xf32> to vector<8x32xf32>
    %308 = arith.mulf %305, %266 : vector<8x32xf32>
    %309 = arith.mulf %304, %306 : vector<8x32xf32>
    %310 = arith.addf %308, %309 : vector<8x32xf32>
    %311 = math.tanh %310 : vector<8x32xf32>
    %312 = arith.mulf %307, %311 : vector<8x32xf32>
    %313 = arith.index_cast %271 : i32 to index
    %c0_149 = arith.constant 0 : index
    %314 = vector.load %arg12[%313, %c0_149] : memref<64x32xf32, #tpu.memory_space<vmem>>, vector<8x32xf32>
    tpu.vector_store %arg12[%313, %c0_149], %312 {strides = array<i32>} : memref<64x32xf32, #tpu.memory_space<vmem>>, vector<8x32xf32>,
    %c5_i32 = arith.constant 5 : i32
    %c8_i32_150 = arith.constant 8 : i32
    %315 = arith.muli %c5_i32, %c8_i32_150 : i32
    %c0_151 = arith.constant 0 : index
    %c0_152 = arith.constant 0 : index
    %316 = vector.load %arg4[%c0_151, %c0_152] : memref<32x128xf32, #tpu.memory_space<vmem>>, vector<32x128xf32>
    %cst_153 = arith.constant dense<0.000000e+00> : vector<8x128xf32>
    %317 = tpu.matmul %312, %316, %cst_153 {dimension_numbers = #tpu.dot_dimension_numbers<[1], [0], [0], [1], [0, 0, 1, 1], [], []>} : vector<8x32xf32>, vector<32x128xf32>, vector<8x128xf32> -> vector<8x128xf32>
    %c0_154 = arith.constant 0 : index
    %c0_155 = arith.constant 0 : index
    %318 = vector.load %arg5[%c0_154, %c0_155] : memref<1x128xf32, #tpu.memory_space<vmem>>, vector<1x128xf32>
    %319 = vector.broadcast %318 : vector<1x128xf32> to vector<8x128xf32>
    %320 = arith.addf %317, %319 : vector<8x128xf32>
    %321 = arith.index_cast %315 : i32 to index
    %c0_156 = arith.constant 0 : index
    %322 = vector.load %arg11[%321, %c0_156] : memref<64x128xf32, #tpu.memory_space<vmem>>, vector<8x128xf32>
    %c0_157 = arith.constant 0 : index
    %c0_158 = arith.constant 0 : index
    %323 = vector.load %arg2[%c0_157, %c0_158] : memref<32x128xf32, #tpu.memory_space<vmem>>, vector<32x128xf32>
    %cst_159 = arith.constant dense<0.000000e+00> : vector<8x128xf32>
    %324 = tpu.matmul %295, %323, %cst_159 {dimension_numbers = #tpu.dot_dimension_numbers<[1], [0], [0], [1], [0, 0, 1, 1], [], []>} : vector<8x32xf32>, vector<32x128xf32>, vector<8x128xf32> -> vector<8x128xf32>
    %325 = arith.addf %322, %324 : vector<8x128xf32>
    %326 = math.tanh %325 : vector<8x128xf32>
    %327 = vector.broadcast %8 : vector<1x128xf32> to vector<8x128xf32>
    %328 = arith.mulf %326, %327 : vector<8x128xf32>
    %329 = vector.broadcast %11 : vector<1x128xf32> to vector<8x128xf32>
    %330 = arith.addf %328, %329 : vector<8x128xf32>
    %331 = vector.extract_strided_slice %330 {offsets = [0, 0], sizes = [8, 32], strides = [1, 1]} : vector<8x128xf32> to vector<8x32xf32>
    %332 = vector.extract_strided_slice %330 {offsets = [0, 32], sizes = [8, 32], strides = [1, 1]} : vector<8x128xf32> to vector<8x32xf32>
    %333 = vector.extract_strided_slice %330 {offsets = [0, 64], sizes = [8, 32], strides = [1, 1]} : vector<8x128xf32> to vector<8x32xf32>
    %334 = vector.extract_strided_slice %330 {offsets = [0, 96], sizes = [8, 32], strides = [1, 1]} : vector<8x128xf32> to vector<8x32xf32>
    %335 = arith.mulf %332, %293 : vector<8x32xf32>
    %336 = arith.mulf %331, %333 : vector<8x32xf32>
    %337 = arith.addf %335, %336 : vector<8x32xf32>
    %338 = math.tanh %337 : vector<8x32xf32>
    %339 = arith.mulf %334, %338 : vector<8x32xf32>
    %c0_160 = arith.constant 0 : index
    %c0_161 = arith.constant 0 : index
    %340 = vector.load %arg3[%c0_160, %c0_161] : memref<32x128xf32, #tpu.memory_space<vmem>>, vector<32x128xf32>
    %cst_162 = arith.constant dense<0.000000e+00> : vector<8x128xf32>
    %341 = tpu.matmul %339, %340, %cst_162 {dimension_numbers = #tpu.dot_dimension_numbers<[1], [0], [0], [1], [0, 0, 1, 1], [], []>} : vector<8x32xf32>, vector<32x128xf32>, vector<8x128xf32> -> vector<8x128xf32>
    %342 = arith.addf %341, %320 : vector<8x128xf32>
    %343 = math.tanh %342 : vector<8x128xf32>
    %344 = vector.broadcast %8 : vector<1x128xf32> to vector<8x128xf32>
    %345 = arith.mulf %343, %344 : vector<8x128xf32>
    %346 = vector.broadcast %11 : vector<1x128xf32> to vector<8x128xf32>
    %347 = arith.addf %345, %346 : vector<8x128xf32>
    %348 = vector.extract_strided_slice %347 {offsets = [0, 0], sizes = [8, 32], strides = [1, 1]} : vector<8x128xf32> to vector<8x32xf32>
    %349 = vector.extract_strided_slice %347 {offsets = [0, 32], sizes = [8, 32], strides = [1, 1]} : vector<8x128xf32> to vector<8x32xf32>
    %350 = vector.extract_strided_slice %347 {offsets = [0, 64], sizes = [8, 32], strides = [1, 1]} : vector<8x128xf32> to vector<8x32xf32>
    %351 = vector.extract_strided_slice %347 {offsets = [0, 96], sizes = [8, 32], strides = [1, 1]} : vector<8x128xf32> to vector<8x32xf32>
    %352 = arith.mulf %349, %310 : vector<8x32xf32>
    %353 = arith.mulf %348, %350 : vector<8x32xf32>
    %354 = arith.addf %352, %353 : vector<8x32xf32>
    %355 = math.tanh %354 : vector<8x32xf32>
    %356 = arith.mulf %351, %355 : vector<8x32xf32>
    %357 = arith.index_cast %315 : i32 to index
    %c0_163 = arith.constant 0 : index
    %358 = vector.load %arg12[%357, %c0_163] : memref<64x32xf32, #tpu.memory_space<vmem>>, vector<8x32xf32>
    tpu.vector_store %arg12[%357, %c0_163], %356 {strides = array<i32>} : memref<64x32xf32, #tpu.memory_space<vmem>>, vector<8x32xf32>,
    %c6_i32 = arith.constant 6 : i32
    %c8_i32_164 = arith.constant 8 : i32
    %359 = arith.muli %c6_i32, %c8_i32_164 : i32
    %c0_165 = arith.constant 0 : index
    %c0_166 = arith.constant 0 : index
    %360 = vector.load %arg4[%c0_165, %c0_166] : memref<32x128xf32, #tpu.memory_space<vmem>>, vector<32x128xf32>
    %cst_167 = arith.constant dense<0.000000e+00> : vector<8x128xf32>
    %361 = tpu.matmul %356, %360, %cst_167 {dimension_numbers = #tpu.dot_dimension_numbers<[1], [0], [0], [1], [0, 0, 1, 1], [], []>} : vector<8x32xf32>, vector<32x128xf32>, vector<8x128xf32> -> vector<8x128xf32>
    %c0_168 = arith.constant 0 : index
    %c0_169 = arith.constant 0 : index
    %362 = vector.load %arg5[%c0_168, %c0_169] : memref<1x128xf32, #tpu.memory_space<vmem>>, vector<1x128xf32>
    %363 = vector.broadcast %362 : vector<1x128xf32> to vector<8x128xf32>
    %364 = arith.addf %361, %363 : vector<8x128xf32>
    %365 = arith.index_cast %359 : i32 to index
    %c0_170 = arith.constant 0 : index
    %366 = vector.load %arg11[%365, %c0_170] : memref<64x128xf32, #tpu.memory_space<vmem>>, vector<8x128xf32>
    %c0_171 = arith.constant 0 : index
    %c0_172 = arith.constant 0 : index
    %367 = vector.load %arg2[%c0_171, %c0_172] : memref<32x128xf32, #tpu.memory_space<vmem>>, vector<32x128xf32>
    %cst_173 = arith.constant dense<0.000000e+00> : vector<8x128xf32>
    %368 = tpu.matmul %339, %367, %cst_173 {dimension_numbers = #tpu.dot_dimension_numbers<[1], [0], [0], [1], [0, 0, 1, 1], [], []>} : vector<8x32xf32>, vector<32x128xf32>, vector<8x128xf32> -> vector<8x128xf32>
    %369 = arith.addf %366, %368 : vector<8x128xf32>
    %370 = math.tanh %369 : vector<8x128xf32>
    %371 = vector.broadcast %8 : vector<1x128xf32> to vector<8x128xf32>
    %372 = arith.mulf %370, %371 : vector<8x128xf32>
    %373 = vector.broadcast %11 : vector<1x128xf32> to vector<8x128xf32>
    %374 = arith.addf %372, %373 : vector<8x128xf32>
    %375 = vector.extract_strided_slice %374 {offsets = [0, 0], sizes = [8, 32], strides = [1, 1]} : vector<8x128xf32> to vector<8x32xf32>
    %376 = vector.extract_strided_slice %374 {offsets = [0, 32], sizes = [8, 32], strides = [1, 1]} : vector<8x128xf32> to vector<8x32xf32>
    %377 = vector.extract_strided_slice %374 {offsets = [0, 64], sizes = [8, 32], strides = [1, 1]} : vector<8x128xf32> to vector<8x32xf32>
    %378 = vector.extract_strided_slice %374 {offsets = [0, 96], sizes = [8, 32], strides = [1, 1]} : vector<8x128xf32> to vector<8x32xf32>
    %379 = arith.mulf %376, %337 : vector<8x32xf32>
    %380 = arith.mulf %375, %377 : vector<8x32xf32>
    %381 = arith.addf %379, %380 : vector<8x32xf32>
    %382 = math.tanh %381 : vector<8x32xf32>
    %383 = arith.mulf %378, %382 : vector<8x32xf32>
    %c0_174 = arith.constant 0 : index
    %c0_175 = arith.constant 0 : index
    %384 = vector.load %arg3[%c0_174, %c0_175] : memref<32x128xf32, #tpu.memory_space<vmem>>, vector<32x128xf32>
    %cst_176 = arith.constant dense<0.000000e+00> : vector<8x128xf32>
    %385 = tpu.matmul %383, %384, %cst_176 {dimension_numbers = #tpu.dot_dimension_numbers<[1], [0], [0], [1], [0, 0, 1, 1], [], []>} : vector<8x32xf32>, vector<32x128xf32>, vector<8x128xf32> -> vector<8x128xf32>
    %386 = arith.addf %385, %364 : vector<8x128xf32>
    %387 = math.tanh %386 : vector<8x128xf32>
    %388 = vector.broadcast %8 : vector<1x128xf32> to vector<8x128xf32>
    %389 = arith.mulf %387, %388 : vector<8x128xf32>
    %390 = vector.broadcast %11 : vector<1x128xf32> to vector<8x128xf32>
    %391 = arith.addf %389, %390 : vector<8x128xf32>
    %392 = vector.extract_strided_slice %391 {offsets = [0, 0], sizes = [8, 32], strides = [1, 1]} : vector<8x128xf32> to vector<8x32xf32>
    %393 = vector.extract_strided_slice %391 {offsets = [0, 32], sizes = [8, 32], strides = [1, 1]} : vector<8x128xf32> to vector<8x32xf32>
    %394 = vector.extract_strided_slice %391 {offsets = [0, 64], sizes = [8, 32], strides = [1, 1]} : vector<8x128xf32> to vector<8x32xf32>
    %395 = vector.extract_strided_slice %391 {offsets = [0, 96], sizes = [8, 32], strides = [1, 1]} : vector<8x128xf32> to vector<8x32xf32>
    %396 = arith.mulf %393, %354 : vector<8x32xf32>
    %397 = arith.mulf %392, %394 : vector<8x32xf32>
    %398 = arith.addf %396, %397 : vector<8x32xf32>
    %399 = math.tanh %398 : vector<8x32xf32>
    %400 = arith.mulf %395, %399 : vector<8x32xf32>
    %401 = arith.index_cast %359 : i32 to index
    %c0_177 = arith.constant 0 : index
    %402 = vector.load %arg12[%401, %c0_177] : memref<64x32xf32, #tpu.memory_space<vmem>>, vector<8x32xf32>
    tpu.vector_store %arg12[%401, %c0_177], %400 {strides = array<i32>} : memref<64x32xf32, #tpu.memory_space<vmem>>, vector<8x32xf32>,
    %c7_i32 = arith.constant 7 : i32
    %c8_i32_178 = arith.constant 8 : i32
    %403 = arith.muli %c7_i32, %c8_i32_178 : i32
    %c0_179 = arith.constant 0 : index
    %c0_180 = arith.constant 0 : index
    %404 = vector.load %arg4[%c0_179, %c0_180] : memref<32x128xf32, #tpu.memory_space<vmem>>, vector<32x128xf32>
    %cst_181 = arith.constant dense<0.000000e+00> : vector<8x128xf32>
    %405 = tpu.matmul %400, %404, %cst_181 {dimension_numbers = #tpu.dot_dimension_numbers<[1], [0], [0], [1], [0, 0, 1, 1], [], []>} : vector<8x32xf32>, vector<32x128xf32>, vector<8x128xf32> -> vector<8x128xf32>
    %c0_182 = arith.constant 0 : index
    %c0_183 = arith.constant 0 : index
    %406 = vector.load %arg5[%c0_182, %c0_183] : memref<1x128xf32, #tpu.memory_space<vmem>>, vector<1x128xf32>
    %407 = vector.broadcast %406 : vector<1x128xf32> to vector<8x128xf32>
    %408 = arith.addf %405, %407 : vector<8x128xf32>
    %409 = arith.index_cast %403 : i32 to index
    %c0_184 = arith.constant 0 : index
    %410 = vector.load %arg11[%409, %c0_184] : memref<64x128xf32, #tpu.memory_space<vmem>>, vector<8x128xf32>
    %c0_185 = arith.constant 0 : index
    %c0_186 = arith.constant 0 : index
    %411 = vector.load %arg2[%c0_185, %c0_186] : memref<32x128xf32, #tpu.memory_space<vmem>>, vector<32x128xf32>
    %cst_187 = arith.constant dense<0.000000e+00> : vector<8x128xf32>
    %412 = tpu.matmul %383, %411, %cst_187 {dimension_numbers = #tpu.dot_dimension_numbers<[1], [0], [0], [1], [0, 0, 1, 1], [], []>} : vector<8x32xf32>, vector<32x128xf32>, vector<8x128xf32> -> vector<8x128xf32>
    %413 = arith.addf %410, %412 : vector<8x128xf32>
    %414 = math.tanh %413 : vector<8x128xf32>
    %415 = vector.broadcast %8 : vector<1x128xf32> to vector<8x128xf32>
    %416 = arith.mulf %414, %415 : vector<8x128xf32>
    %417 = vector.broadcast %11 : vector<1x128xf32> to vector<8x128xf32>
    %418 = arith.addf %416, %417 : vector<8x128xf32>
    %419 = vector.extract_strided_slice %418 {offsets = [0, 0], sizes = [8, 32], strides = [1, 1]} : vector<8x128xf32> to vector<8x32xf32>
    %420 = vector.extract_strided_slice %418 {offsets = [0, 32], sizes = [8, 32], strides = [1, 1]} : vector<8x128xf32> to vector<8x32xf32>
    %421 = vector.extract_strided_slice %418 {offsets = [0, 64], sizes = [8, 32], strides = [1, 1]} : vector<8x128xf32> to vector<8x32xf32>
    %422 = vector.extract_strided_slice %418 {offsets = [0, 96], sizes = [8, 32], strides = [1, 1]} : vector<8x128xf32> to vector<8x32xf32>
    %423 = arith.mulf %420, %381 : vector<8x32xf32>
    %424 = arith.mulf %419, %421 : vector<8x32xf32>
    %425 = arith.addf %423, %424 : vector<8x32xf32>
    %426 = math.tanh %425 : vector<8x32xf32>
    %427 = arith.mulf %422, %426 : vector<8x32xf32>
    %c0_188 = arith.constant 0 : index
    %c0_189 = arith.constant 0 : index
    %428 = vector.load %arg3[%c0_188, %c0_189] : memref<32x128xf32, #tpu.memory_space<vmem>>, vector<32x128xf32>
    %cst_190 = arith.constant dense<0.000000e+00> : vector<8x128xf32>
    %429 = tpu.matmul %427, %428, %cst_190 {dimension_numbers = #tpu.dot_dimension_numbers<[1], [0], [0], [1], [0, 0, 1, 1], [], []>} : vector<8x32xf32>, vector<32x128xf32>, vector<8x128xf32> -> vector<8x128xf32>
    %430 = arith.addf %429, %408 : vector<8x128xf32>
    %431 = math.tanh %430 : vector<8x128xf32>
    %432 = vector.broadcast %8 : vector<1x128xf32> to vector<8x128xf32>
    %433 = arith.mulf %431, %432 : vector<8x128xf32>
    %434 = vector.broadcast %11 : vector<1x128xf32> to vector<8x128xf32>
    %435 = arith.addf %433, %434 : vector<8x128xf32>
    %436 = vector.extract_strided_slice %435 {offsets = [0, 0], sizes = [8, 32], strides = [1, 1]} : vector<8x128xf32> to vector<8x32xf32>
    %437 = vector.extract_strided_slice %435 {offsets = [0, 32], sizes = [8, 32], strides = [1, 1]} : vector<8x128xf32> to vector<8x32xf32>
    %438 = vector.extract_strided_slice %435 {offsets = [0, 64], sizes = [8, 32], strides = [1, 1]} : vector<8x128xf32> to vector<8x32xf32>
    %439 = vector.extract_strided_slice %435 {offsets = [0, 96], sizes = [8, 32], strides = [1, 1]} : vector<8x128xf32> to vector<8x32xf32>
    %440 = arith.mulf %437, %398 : vector<8x32xf32>
    %441 = arith.mulf %436, %438 : vector<8x32xf32>
    %442 = arith.addf %440, %441 : vector<8x32xf32>
    %443 = math.tanh %442 : vector<8x32xf32>
    %444 = arith.mulf %439, %443 : vector<8x32xf32>
    %445 = arith.index_cast %403 : i32 to index
    %c0_191 = arith.constant 0 : index
    %446 = vector.load %arg12[%445, %c0_191] : memref<64x32xf32, #tpu.memory_space<vmem>>, vector<8x32xf32>
    tpu.vector_store %arg12[%445, %c0_191], %444 {strides = array<i32>} : memref<64x32xf32, #tpu.memory_space<vmem>>, vector<8x32xf32>,
    %c8_i32_192 = arith.constant 8 : i32
    %c0_193 = arith.constant 0 : index
    %c0_194 = arith.constant 0 : index
    %447 = vector.load %arg12[%c0_193, %c0_194] : memref<64x32xf32, #tpu.memory_space<vmem>>, vector<64x32xf32>
    %c0_195 = arith.constant 0 : index
    %c0_196 = arith.constant 0 : index
    %448 = vector.load %arg6[%c0_195, %c0_196] : memref<32x128xf32, #tpu.memory_space<vmem>>, vector<32x128xf32>
    %cst_197 = arith.constant dense<0.000000e+00> : vector<64x128xf32>
    %449 = tpu.matmul %447, %448, %cst_197 {dimension_numbers = #tpu.dot_dimension_numbers<[1], [0], [0], [1], [0, 0, 1, 1], [], []>} : vector<64x32xf32>, vector<32x128xf32>, vector<64x128xf32> -> vector<64x128xf32>
    %c0_198 = arith.constant 0 : index
    %c0_199 = arith.constant 0 : index
    %450 = vector.load %arg7[%c0_198, %c0_199] : memref<1x128xf32, #tpu.memory_space<vmem>>, vector<1x128xf32>
    %451 = vector.broadcast %450 : vector<1x128xf32> to vector<64x128xf32>
    %452 = arith.addf %449, %451 : vector<64x128xf32>
    %453 = vector.extract_strided_slice %452 {offsets = [0, 0], sizes = [1, 128], strides = [1, 1]} : vector<64x128xf32> to vector<1x128xf32>
    %c0_200 = arith.constant 0 : index
    %c0_201 = arith.constant 0 : index
    %454 = vector.load %arg8[%c0_200, %c0_201] : memref<16x128xf32, #tpu.memory_space<vmem>>, vector<1x128xf32>
    tpu.vector_store %arg8[%c0_200, %c0_201], %453 {strides = array<i32>} : memref<16x128xf32, #tpu.memory_space<vmem>>, vector<1x128xf32>,
    %455 = vector.extract_strided_slice %452 {offsets = [8, 0], sizes = [1, 128], strides = [1, 1]} : vector<64x128xf32> to vector<1x128xf32>
    %c1_202 = arith.constant 1 : index
    %c0_203 = arith.constant 0 : index
    %456 = vector.load %arg8[%c1_202, %c0_203] : memref<16x128xf32, #tpu.memory_space<vmem>>, vector<1x128xf32>
    tpu.vector_store %arg8[%c1_202, %c0_203], %455 {strides = array<i32>} : memref<16x128xf32, #tpu.memory_space<vmem>>, vector<1x128xf32>,
    %457 = vector.extract_strided_slice %452 {offsets = [16, 0], sizes = [1, 128], strides = [1, 1]} : vector<64x128xf32> to vector<1x128xf32>
    %c2_204 = arith.constant 2 : index
    %c0_205 = arith.constant 0 : index
    %458 = vector.load %arg8[%c2_204, %c0_205] : memref<16x128xf32, #tpu.memory_space<vmem>>, vector<1x128xf32>
    tpu.vector_store %arg8[%c2_204, %c0_205], %457 {strides = array<i32>} : memref<16x128xf32, #tpu.memory_space<vmem>>, vector<1x128xf32>,
    %459 = vector.extract_strided_slice %452 {offsets = [24, 0], sizes = [1, 128], strides = [1, 1]} : vector<64x128xf32> to vector<1x128xf32>
    %c3_206 = arith.constant 3 : index
    %c0_207 = arith.constant 0 : index
    %460 = vector.load %arg8[%c3_206, %c0_207] : memref<16x128xf32, #tpu.memory_space<vmem>>, vector<1x128xf32>
    tpu.vector_store %arg8[%c3_206, %c0_207], %459 {strides = array<i32>} : memref<16x128xf32, #tpu.memory_space<vmem>>, vector<1x128xf32>,
    %461 = vector.extract_strided_slice %452 {offsets = [32, 0], sizes = [1, 128], strides = [1, 1]} : vector<64x128xf32> to vector<1x128xf32>
    %c4_208 = arith.constant 4 : index
    %c0_209 = arith.constant 0 : index
    %462 = vector.load %arg8[%c4_208, %c0_209] : memref<16x128xf32, #tpu.memory_space<vmem>>, vector<1x128xf32>
    tpu.vector_store %arg8[%c4_208, %c0_209], %461 {strides = array<i32>} : memref<16x128xf32, #tpu.memory_space<vmem>>, vector<1x128xf32>,
    %463 = vector.extract_strided_slice %452 {offsets = [40, 0], sizes = [1, 128], strides = [1, 1]} : vector<64x128xf32> to vector<1x128xf32>
    %c5_210 = arith.constant 5 : index
    %c0_211 = arith.constant 0 : index
    %464 = vector.load %arg8[%c5_210, %c0_211] : memref<16x128xf32, #tpu.memory_space<vmem>>, vector<1x128xf32>
    tpu.vector_store %arg8[%c5_210, %c0_211], %463 {strides = array<i32>} : memref<16x128xf32, #tpu.memory_space<vmem>>, vector<1x128xf32>,
    %465 = vector.extract_strided_slice %452 {offsets = [48, 0], sizes = [1, 128], strides = [1, 1]} : vector<64x128xf32> to vector<1x128xf32>
    %c6_212 = arith.constant 6 : index
    %c0_213 = arith.constant 0 : index
    %466 = vector.load %arg8[%c6_212, %c0_213] : memref<16x128xf32, #tpu.memory_space<vmem>>, vector<1x128xf32>
    tpu.vector_store %arg8[%c6_212, %c0_213], %465 {strides = array<i32>} : memref<16x128xf32, #tpu.memory_space<vmem>>, vector<1x128xf32>,
    %467 = vector.extract_strided_slice %452 {offsets = [56, 0], sizes = [1, 128], strides = [1, 1]} : vector<64x128xf32> to vector<1x128xf32>
    %c7_214 = arith.constant 7 : index
    %c0_215 = arith.constant 0 : index
    %468 = vector.load %arg8[%c7_214, %c0_215] : memref<16x128xf32, #tpu.memory_space<vmem>>, vector<1x128xf32>
    tpu.vector_store %arg8[%c7_214, %c0_215], %467 {strides = array<i32>} : memref<16x128xf32, #tpu.memory_space<vmem>>, vector<1x128xf32>,
    %469 = vector.extract_strided_slice %452 {offsets = [1, 0], sizes = [1, 128], strides = [1, 1]} : vector<64x128xf32> to vector<1x128xf32>
    %c8_216 = arith.constant 8 : index
    %c0_217 = arith.constant 0 : index
    %470 = vector.load %arg8[%c8_216, %c0_217] : memref<16x128xf32, #tpu.memory_space<vmem>>, vector<1x128xf32>
    tpu.vector_store %arg8[%c8_216, %c0_217], %469 {strides = array<i32>} : memref<16x128xf32, #tpu.memory_space<vmem>>, vector<1x128xf32>,
    %471 = vector.extract_strided_slice %452 {offsets = [9, 0], sizes = [1, 128], strides = [1, 1]} : vector<64x128xf32> to vector<1x128xf32>
    %c9_218 = arith.constant 9 : index
    %c0_219 = arith.constant 0 : index
    %472 = vector.load %arg8[%c9_218, %c0_219] : memref<16x128xf32, #tpu.memory_space<vmem>>, vector<1x128xf32>
    tpu.vector_store %arg8[%c9_218, %c0_219], %471 {strides = array<i32>} : memref<16x128xf32, #tpu.memory_space<vmem>>, vector<1x128xf32>,
    %473 = vector.extract_strided_slice %452 {offsets = [17, 0], sizes = [1, 128], strides = [1, 1]} : vector<64x128xf32> to vector<1x128xf32>
    %c10 = arith.constant 10 : index
    %c0_220 = arith.constant 0 : index
    %474 = vector.load %arg8[%c10, %c0_220] : memref<16x128xf32, #tpu.memory_space<vmem>>, vector<1x128xf32>
    tpu.vector_store %arg8[%c10, %c0_220], %473 {strides = array<i32>} : memref<16x128xf32, #tpu.memory_space<vmem>>, vector<1x128xf32>,
    %475 = vector.extract_strided_slice %452 {offsets = [25, 0], sizes = [1, 128], strides = [1, 1]} : vector<64x128xf32> to vector<1x128xf32>
    %c11 = arith.constant 11 : index
    %c0_221 = arith.constant 0 : index
    %476 = vector.load %arg8[%c11, %c0_221] : memref<16x128xf32, #tpu.memory_space<vmem>>, vector<1x128xf32>
    tpu.vector_store %arg8[%c11, %c0_221], %475 {strides = array<i32>} : memref<16x128xf32, #tpu.memory_space<vmem>>, vector<1x128xf32>,
    %477 = vector.extract_strided_slice %452 {offsets = [33, 0], sizes = [1, 128], strides = [1, 1]} : vector<64x128xf32> to vector<1x128xf32>
    %c12 = arith.constant 12 : index
    %c0_222 = arith.constant 0 : index
    %478 = vector.load %arg8[%c12, %c0_222] : memref<16x128xf32, #tpu.memory_space<vmem>>, vector<1x128xf32>
    tpu.vector_store %arg8[%c12, %c0_222], %477 {strides = array<i32>} : memref<16x128xf32, #tpu.memory_space<vmem>>, vector<1x128xf32>,
    %479 = vector.extract_strided_slice %452 {offsets = [41, 0], sizes = [1, 128], strides = [1, 1]} : vector<64x128xf32> to vector<1x128xf32>
    %c13 = arith.constant 13 : index
    %c0_223 = arith.constant 0 : index
    %480 = vector.load %arg8[%c13, %c0_223] : memref<16x128xf32, #tpu.memory_space<vmem>>, vector<1x128xf32>
    tpu.vector_store %arg8[%c13, %c0_223], %479 {strides = array<i32>} : memref<16x128xf32, #tpu.memory_space<vmem>>, vector<1x128xf32>,
    %481 = vector.extract_strided_slice %452 {offsets = [49, 0], sizes = [1, 128], strides = [1, 1]} : vector<64x128xf32> to vector<1x128xf32>
    %c14 = arith.constant 14 : index
    %c0_224 = arith.constant 0 : index
    %482 = vector.load %arg8[%c14, %c0_224] : memref<16x128xf32, #tpu.memory_space<vmem>>, vector<1x128xf32>
    tpu.vector_store %arg8[%c14, %c0_224], %481 {strides = array<i32>} : memref<16x128xf32, #tpu.memory_space<vmem>>, vector<1x128xf32>,
    %483 = vector.extract_strided_slice %452 {offsets = [57, 0], sizes = [1, 128], strides = [1, 1]} : vector<64x128xf32> to vector<1x128xf32>
    %c15 = arith.constant 15 : index
    %c0_225 = arith.constant 0 : index
    %484 = vector.load %arg8[%c15, %c0_225] : memref<16x128xf32, #tpu.memory_space<vmem>>, vector<1x128xf32>
    tpu.vector_store %arg8[%c15, %c0_225], %483 {strides = array<i32>} : memref<16x128xf32, #tpu.memory_space<vmem>>, vector<1x128xf32>,
    %c0_226 = arith.constant 0 : index
    %c0_227 = arith.constant 0 : index
    %c0_228 = arith.constant 0 : index
    %485 = vector.load %arg9[%c0_226, %c0_227, %c0_228] : memref<2x8x32xf32, #tpu.memory_space<vmem>>, vector<1x8x32xf32>
    %486 = vector.shape_cast %485 : vector<1x8x32xf32> to vector<8x32xf32>
    %487 = vector.shape_cast %427 : vector<8x32xf32> to vector<1x8x32xf32>
    tpu.vector_store %arg9[%c0_226, %c0_227, %c0_228], %487 {strides = array<i32>} : memref<2x8x32xf32, #tpu.memory_space<vmem>>, vector<1x8x32xf32>,
    %c1_229 = arith.constant 1 : index
    %c0_230 = arith.constant 0 : index
    %c0_231 = arith.constant 0 : index
    %488 = vector.load %arg9[%c1_229, %c0_230, %c0_231] : memref<2x8x32xf32, #tpu.memory_space<vmem>>, vector<1x8x32xf32>
    %489 = vector.shape_cast %488 : vector<1x8x32xf32> to vector<8x32xf32>
    %490 = vector.shape_cast %444 : vector<8x32xf32> to vector<1x8x32xf32>
    tpu.vector_store %arg9[%c1_229, %c0_230, %c0_231], %490 {strides = array<i32>} : memref<2x8x32xf32, #tpu.memory_space<vmem>>, vector<1x8x32xf32>,
    %c0_232 = arith.constant 0 : index
    %c0_233 = arith.constant 0 : index
    %c0_234 = arith.constant 0 : index
    %491 = vector.load %arg10[%c0_232, %c0_233, %c0_234] : memref<2x8x32xf32, #tpu.memory_space<vmem>>, vector<1x8x32xf32>
    %492 = vector.shape_cast %491 : vector<1x8x32xf32> to vector<8x32xf32>
    %493 = vector.shape_cast %425 : vector<8x32xf32> to vector<1x8x32xf32>
    tpu.vector_store %arg10[%c0_232, %c0_233, %c0_234], %493 {strides = array<i32>} : memref<2x8x32xf32, #tpu.memory_space<vmem>>, vector<1x8x32xf32>,
    %c1_235 = arith.constant 1 : index
    %c0_236 = arith.constant 0 : index
    %c0_237 = arith.constant 0 : index
    %494 = vector.load %arg10[%c1_235, %c0_236, %c0_237] : memref<2x8x32xf32, #tpu.memory_space<vmem>>, vector<1x8x32xf32>
    %495 = vector.shape_cast %494 : vector<1x8x32xf32> to vector<8x32xf32>
    %496 = vector.shape_cast %442 : vector<8x32xf32> to vector<1x8x32xf32>
    tpu.vector_store %arg10[%c1_235, %c0_236, %c0_237], %496 {strides = array<i32>} : memref<2x8x32xf32, #tpu.memory_space<vmem>>, vector<1x8x32xf32>,
    return
  }
}

</mosaic_0001>

<bundles_post_ra>
// kernel: char_rnn_forward.1
= control target key start
LH: loop header
LB: loop body
LE: loop exit
PB: predicated region body
PF: predicated region fallthrough
CT: control target
= control target key end

     0   :  { %16 = vsyncpa [#allocation7], 0  ;;  %s4141_s0 = inlined_call_operand.hbm [shape: s32[2,8], index: 0, kind: input, shape index: {}]   ;;  %s4142_s1 = inlined_call_operand.hbm [shape: f32[40,1,128], index: 1, kind: input, shape index: {}]   ;;  %s4143_s2 = inlined_call_operand.hbm [shape: f32[32,128], index: 2, kind: input, shape index: {}]   ;;  %s4144_s3 = inlined_call_operand.hbm [shape: f32[32,128], index: 3, kind: input, shape index: {}]   ;;  %s4145_s4 = inlined_call_operand.hbm [shape: f32[32,128], index: 4, kind: input, shape index: {}]   ;;  %s4146_s5 = inlined_call_operand.vmem [shape: f32[1,128], index: 5, kind: input, shape index: {}]   ;;  %s4147_s6 = inlined_call_operand.hbm [shape: f32[32,128], index: 6, kind: input, shape index: {}]   ;;  %s4148_s7 = inlined_call_operand.vmem [shape: f32[1,128], index: 7, kind: input, shape index: {}]   ;;  %s4149_s8 = inlined_call_operand.hbm [shape: f32[16,128], index: 8, kind: output, shape index: {0}]   ;;  %s4150_s9 = inlined_call_operand.vmem [shape: f32[2,8,32], index: 9, kind: output, shape index: {1}]   ;;  %s4151_s10 = inlined_call_operand.vmem [shape: f32[2,8,32], index: 10, kind: output, shape index: {2}]  }
   0x1   :  { %17 = vsyncpa [#allocation5], 0 }
   0x2   :  { %18 = vsyncpa [#allocation10], 0 }
   0x3   :  { %19 = vsyncpa [#allocation13], 0 }
   0x4   :  { %20 = vsyncpa [#allocation6], 0  ;;  %s3562_s13 = smov [#allocation9]   ;;  %s3410_s17 = scalar_lea.hbm %s4143_s2, 512 }
   0x5   :  { %s46_s14 = sshll.u32 %s3562_s13, 4  ;;  %p3411_p0 = scmp.ne.s32.totalorder %s4143_s2, %s3410_s17  ;;  %s47_s14 = int_to_ptr.vmem [resolvable:$true] %s46_s14 }
   0x6   :  { %p3414_p1 = scmp.lt.u32.totalorder %s3410_s17, %s4143_s2 }
   0x8   :  { %p3416_p2 = pnand %p3414_p1, %p3411_p0 }
   0xa   :  { %3419 = shalt.err (!%p3416_p2)
}
   0xb   :  { %s3420_s22 = scalar_lea.vmem %s47_s14, 512  ;;  %p3425_p4 = scmp.lt.s32.totalorder %s47_s14, %s47_s14 }
   0xc   :  { %p3421_p3 = scmp.ne.s32.totalorder %s47_s14, %s3420_s22  ;;  %p3426_p5 = scmp.lt.s32.totalorder %s3420_s22, %s3420_s22 }
   0xe   :  { %p3427_p6 = por %p3426_p5, %p3425_p4 }
  0x10   :  { %p3428_p7 = pnand %p3427_p6, %p3421_p3 }
  0x12   :  { %3431 = shalt.err (!%p3428_p7)
}
  0x13   :  { %s3563_s23 = smov 128   ;;  %s3564_s24 = smov 8  }
  0x14   :  { %52 = dma.hbm_to_vmem [thread:$0]  %s4143_s2, 512, %s47_s14, [#allocation10], %s3563_s23, %s3563_s23, %s3564_s24  }
  0x15   :  { %s3565_s27 = smov [#allocation12]   ;;  %s3432_s11 = scalar_lea.hbm %s4145_s4, 512 }
  0x16   :  { %s70_s28 = sshll.u32 %s3565_s27, 4  ;;  %p3433_p8 = scmp.ne.s32.totalorder %s4145_s4, %s3432_s11  ;;  %s71_s28 = int_to_ptr.vmem [resolvable:$true] %s70_s28 }
  0x17   :  { %p3436_p9 = scmp.lt.u32.totalorder %s3432_s11, %s4145_s4 }
  0x19   :  { %p3438_p10 = pnand %p3436_p9, %p3433_p8 }
  0x1b   :  { %3441 = shalt.err (!%p3438_p10)
}
  0x1c   :  { %s3442_s17 = scalar_lea.vmem %s71_s28, 512  ;;  %p3447_p12 = scmp.lt.s32.totalorder %s71_s28, %s71_s28 }
  0x1d   :  { %p3443_p11 = scmp.ne.s32.totalorder %s71_s28, %s3442_s17  ;;  %p3448_p13 = scmp.lt.s32.totalorder %s3442_s17, %s3442_s17 }
  0x1f   :  { %p3449_p0 = por %p3448_p13, %p3447_p12 }
  0x21   :  { %p3450_p1 = pnand %p3449_p0, %p3443_p11 }
  0x23   :  { %3453 = shalt.err (!%p3450_p1)
}
  0x24   :  { %76 = dma.hbm_to_vmem [thread:$0]  %s4145_s4, 512, %s71_s28, [#allocation13], %s3563_s23, %s3563_s23, %s3564_s24  }
  0x25   :  { %s3454_s20 = scalar_lea.hbm %s4141_s0, 32 }
  0x26   :  { %p3455_p2 = scmp.ne.s32.totalorder %s4141_s0, %s3454_s20  ;;  %p3458_p3 = scmp.lt.u32.totalorder %s3454_s20, %s4141_s0 }
  0x28   :  { %p3460_p4 = pnand %p3458_p3, %p3455_p2 }
  0x2a   :  { %3463 = shalt.err (!%p3460_p4)
}
  0x2b   :  { %s3566_s27 = smov [#allocation4]   ;;  %s3567_s4 = smov [#allocation8]  }
  0x2c   :  { %28 = dma.hbm_to_smem %s4141_s0, 32, %s3566_s27, [#allocation7]  }
  0x2d   :  { %s34_s28 = sshll.u32 %s3567_s4, 4  ;;  %s3464_s13 = scalar_lea.hbm %s4142_s1, 640  ;;  %s35_s28 = int_to_ptr.vmem [resolvable:$true] %s34_s28 }
  0x2e   :  { %p3465_p5 = scmp.ne.s32.totalorder %s4142_s1, %s3464_s13  ;;  %p3468_p6 = scmp.lt.u32.totalorder %s3464_s13, %s4142_s1 }
  0x30   :  { %p3470_p7 = pnand %p3468_p6, %p3465_p5 }
  0x32   :  { %3473 = shalt.err (!%p3470_p7)
}
  0x33   :  { %s3474_s14 = scalar_lea.vmem %s35_s28, 640  ;;  %p3479_p9 = scmp.lt.s32.totalorder %s35_s28, %s35_s28 }
  0x34   :  { %p3475_p8 = scmp.ne.s32.totalorder %s35_s28, %s3474_s14  ;;  %p3480_p10 = scmp.lt.s32.totalorder %s3474_s14, %s3474_s14 }
  0x36   :  { %p3481_p11 = por %p3480_p10, %p3479_p9 }
  0x38   :  { %p3482_p12 = pnand %p3481_p11, %p3475_p8 }
  0x3a   :  { %3485 = shalt.err (!%p3482_p12)
}
  0x3b   :  { %s3568_s0 = smov 16   ;;  %s3569_s18 = smov 1  }
  0x3c   :  { %40 = dma.hbm_to_vmem [thread:$0]  %s4142_s1, 640, %s35_s28, [#allocation5], %s3568_s0, %s3568_s0, %s3569_s18  }
  0x3d   :  { %s3570_s21 = smov [#allocation11]   ;;  %s3571_s25 = smov [#allocation14]  }
  0x3e   :  { %s58_s22 = sshll.u32 %s3570_s21, 4  ;;  %s84_s26 = sshll.u32 %s3571_s25, 4  ;;  %s59_s22 = int_to_ptr.vmem [resolvable:$true] %s58_s22  ;;  %s3689_s26 = int_to_ptr.vmem [resolvable:$true] %s84_s26 }
  0x3f   :  { %s3486_s30 = scalar_lea.hbm %s4144_s3, 512 }
  0x40   :  { %p3487_p13 = scmp.ne.s32.totalorder %s4144_s3, %s3486_s30  ;;  %p3490_p0 = scmp.lt.u32.totalorder %s3486_s30, %s4144_s3 }
  0x42   :  { %p3492_p1 = pnand %p3490_p0, %p3487_p13 }
  0x44   :  { %3495 = shalt.err (!%p3492_p1)
}
  0x45   :  { %s3496_s1 = scalar_lea.vmem %s59_s22, 512  ;;  %p3501_p3 = scmp.lt.s32.totalorder %s59_s22, %s59_s22 }
  0x46   :  { %p3497_p2 = scmp.ne.s32.totalorder %s59_s22, %s3496_s1  ;;  %p3502_p4 = scmp.lt.s32.totalorder %s3496_s1, %s3496_s1 }
  0x48   :  { %p3503_p5 = por %p3502_p4, %p3501_p3 }
  0x4a   :  { %p3504_p6 = pnand %p3503_p5, %p3497_p2 }
  0x4c   :  { %3507 = shalt.err (!%p3504_p6)
}
  0x4d   :  { %64 = dma.hbm_to_vmem [thread:$0]  %s4144_s3, 512, %s59_s22, [#allocation10], %s3563_s23, %s3563_s23, %s3564_s24  }
  0x4e   :  { %s3508_s2 = scalar_lea.hbm %s4147_s6, 512 }
  0x4f   :  { %p3509_p7 = scmp.ne.s32.totalorder %s4147_s6, %s3508_s2  ;;  %p3512_p8 = scmp.lt.u32.totalorder %s3508_s2, %s4147_s6 }
  0x51   :  { %p3514_p9 = pnand %p3512_p8, %p3509_p7 }
  0x53   :  { %3517 = shalt.err (!%p3514_p9)
}
  0x54   :  { %s3518_s20 = scalar_lea.vmem %s3689_s26, 512  ;;  %p3523_p11 = scmp.lt.s32.totalorder %s3689_s26, %s3689_s26 }
  0x55   :  { %p3519_p10 = scmp.ne.s32.totalorder %s3689_s26, %s3518_s20  ;;  %p3524_p12 = scmp.lt.s32.totalorder %s3518_s20, %s3518_s20 }
  0x57   :  { %p3525_p13 = por %p3524_p12, %p3523_p11 }
  0x59   :  { %p3526_p0 = pnand %p3525_p13, %p3519_p10 }
  0x5b   :  { %3529 = shalt.err (!%p3526_p0)
}
  0x5c   :  { %90 = dma.hbm_to_vmem [thread:$0]  %s4147_s6, 512, %s3689_s26, [#allocation13], %s3563_s23, %s3563_s23, %s3564_s24  }
  0x5d   :  { %3552 = dma.done.wait [#allocation7], 32  }
  0x5e   :  { %3553 = vsyncadd [#allocation7], 4294967264 }
  0x5f   :  { %3554 = dma.done.wait [#allocation5], 640  }
  0x60   :  { %3555 = vsyncadd [#allocation5], 4294966656 }
  0x61   :  { %3556 = dma.done.wait [#allocation10], 1024  }
  0x62   :  { %3557 = vsyncadd [#allocation10], 4294966272 }
  0x63   :  { %3558 = dma.done.wait [#allocation13], 1024  }
  0x64   :  { %3559 = vsyncadd [#allocation13], 4294966272 }
  0x65   :  { %111 = sfence }
  0x66   :  { %v191_v0 = vld [vmem:[#allocation12] sm:$0xff]  ;;  %v192_v1 = vld [vmem:[#allocation12 + $0x8] sm:$0xff]  ;;  %v193_v2 = vld [vmem:[#allocation12 + $0x10] sm:$0xff]  ;;  %v3572_v3 = vmov 0.0|0.0   ;;  %vm3573_vm0 = vmmov 0   ;;  %v3574_v6 = vmov 0.0   ;;  %v112_v18 = vlaneseq }
  0x67   :  { %3152 = vmatprep.subr.bf16.mxu1 %v3572_v3  ;;  %v3727_v4 = vpack.c.bf16 %v192_v1, %v191_v0  ;;  %v194_v5 = vld [vmem:[#allocation12 + $0x18] sm:$0xff]  ;;  %2876 = vmatprep.mubr.msk.f32.mxu1 %vm3573_vm0, %v3574_v6  ;;  %119 = vst [vmem:[#allocation2] sm:$0xff] %v3574_v6  ;;  %120 = vst [vmem:[#allocation2 + $0x8] sm:$0xff] %v3574_v6  ;;  %v277_v8 = vld [vmem:[#allocation9] sm:$0xff]  ;;  %s127_s6 = sld [smem:[#allocation4]]  ;;  %v3575_v24 = vmov 0.5  }
  0x68   :  { %121 = vst [vmem:[#allocation2 + $0x10] sm:$0xff] %v3574_v6  ;;  %122 = vst [vmem:[#allocation2 + $0x18] sm:$0xff] %v3574_v6  ;;  %3164 = vmatprep.subr.bf16.mxu0 %v3572_v3  ;;  %2898 = vmatprep.mubr.msk.f32.mxu0 %vm3573_vm0, %v3574_v6  ;;  %v3743_v7 = vpack.c.bf16 %v194_v5, %v193_v2  ;;  %v278_v9 = vld [vmem:[#allocation9 + $0x8] sm:$0xff]  ;;  %v279_v11 = vld [vmem:[#allocation9 + $0x10] sm:$0xff]  ;;  %s2680_s22 = sld [smem:[#allocation4 + $0x80]]  ;;  %v113_v23 = vand.u32 127, %v112_v18 }
  0x69   :  { %123 = vst [vmem:[#allocation2 + $0x20] sm:$0xff] %v3574_v6  ;;  %124 = vst [vmem:[#allocation2 + $0x28] sm:$0xff] %v3574_v6  ;;  %3154 = vmatpush3.bf16.msra.mxu1 %v3727_v4  ;;  %v3747_v10 = vpack.c.bf16 %v278_v9, %v277_v8  ;;  %v280_v12 = vld [vmem:[#allocation9 + $0x18] sm:$0xff]  ;;  %s3576_s27 = smov 64   ;;  %s3577_s29 = smov 32   ;;  %v372_v35 = vld [vmem:[#allocation11] sm:$0xff] }
  0x6a   :  { %125 = vst [vmem:[#allocation2 + $0x30] sm:$0xff] %v3574_v6  ;;  %126 = vst [vmem:[#allocation2 + $0x38] sm:$0xff] %v3574_v6  ;;  %3155 = vmatprep.subr.bf16.mxu1 %v3572_v3  ;;  %v3752_v13 = vpack.c.bf16 %v280_v12, %v279_v11  ;;  %vm114_vm1 = vcmp.ge.s32.totalorder %v113_v23, 64  ;;  %vm115_vm2 = vcmp.lt.s32.totalorder %v113_v23, 96  ;;  %v373_v36 = vld [vmem:[#allocation11 + $0x8] sm:$0xff]  ;;  %v374_v37 = vld [vmem:[#allocation11 + $0x10] sm:$0xff] }
  0x6b   :  { %vm116_vm3 = vmand %vm114_vm1, %vm115_vm2  ;;  %v3779_v38 = vpack.c.bf16 %v373_v36, %v372_v35  ;;  %v375_v39 = vld [vmem:[#allocation11 + $0x18] sm:$0xff]  ;;  %vm202_vm4 = vcmask 261120   ;;  %s2681_s30 = sld [smem:[#allocation4 + $0x1]]  ;;  %s2683_s28 = sld [smem:[#allocation4 + $0x2]] }
  0x6c   :  { %v3768_v25 = vsel %vm116_vm3, 1.0, %v3575_v24  ;;  %v3770_v27 = vsel %vm116_vm3, 0.0, %v3575_v24  ;;  %v3782_v40 = vpack.c.bf16 %v375_v39, %v374_v37  ;;  %s2682_s4 = sld [smem:[#allocation4 + $0x81]]  ;;  %v3806_v47 = vld [vmem:[%s4146_s5] ss:$0 sm:$0xff]  ;;  %s2684_s15 = sld [smem:[#allocation4 + $0x82]] }
  0x6d   :  { %3157 = vmatpush3.bf16.msra.mxu1 %v3743_v7  ;;  %s128_s25 = scalar_lea.vmem [#allocation8], %s127_s6  ;;  %3166 = vmatpush3.bf16.msra.mxu0 %v3779_v38  ;;  %s2685_s2 = sld [smem:[#allocation4 + $0x3]] }
  0x6e   :  { %3158 = vmatprep.subr.bf16.mxu1 %v3572_v3  ;;  %v129_v14 = vld [vmem:[%s128_s25] sm:$0x1]  ;;  %s132_s26 = scalar_lea.vmem [#allocation8], %s2680_s22  ;;  %3167 = vmatprep.subr.bf16.mxu0 %v3572_v3  ;;  %s2686_s14 = sld [smem:[#allocation4 + $0x83]] }
  0x6f   :  { %v133_v15 = vld [vmem:[%s132_s26] sm:$0x1]  ;;  %130 = vst [vmem:[#allocation2] sm:$0x1] %v129_v14  ;;  %s2687_s19 = sld [smem:[#allocation4 + $0x4]]  ;;  %s2689_s6 = sld [smem:[#allocation4 + $0x5]] }
  0x70   :  { %2877 = vmatmul.mubr.f32.vlgmr.msra.gmra.mrb[0].mxu1 %v3574_v6  ;;  %134 = vst [vmem:[#allocation2 + $0x1] sm:$0x1] %v133_v15  ;;  %s2688_s20 = sld [smem:[#allocation4 + $0x84]]  ;;  %s2690_s22 = sld [smem:[#allocation4 + $0x85]] }
  0x71   :  { %3160 = vmatpush3.bf16.msra.mxu1 %v3747_v10  ;;  %2887 = vmatprep.mubr.msk.f32.mxu1 %vm3573_vm0, %v3574_v6  ;;  %s136_s11 = scalar_lea.vmem [#allocation8], %s2681_s30  ;;  %s144_s16 = scalar_lea.vmem [#allocation8], %s2683_s28 }
  0x72   :  { %3161 = vmatprep.subr.bf16.mxu1 %v3572_v3  ;;  %3169 = vmatpush3.bf16.msra.mxu0 %v3782_v40  ;;  %v137_v45 = vld [vmem:[%s136_s11] sm:$0x1]  ;;  %s140_s12 = scalar_lea.vmem [#allocation8], %s2682_s4  ;;  %s148_s17 = scalar_lea.vmem [#allocation8], %s2684_s15 }
  0x73   :  { %3176 = vmatprep.subr.bf16.mxu0 %v3572_v3  ;;  %v141_v46 = vld [vmem:[%s140_s12] sm:$0x1]  ;;  %138 = vst [vmem:[#allocation2 + $0x8] sm:$0x1] %v137_v45  ;;  %s152_s0 = scalar_lea.vmem [#allocation8], %s2685_s2  ;;  %s2691_s30 = sld [smem:[#allocation4 + $0x6]] }
  0x74   :  { %142 = vst [vmem:[#allocation2 + $0x9] sm:$0x1] %v141_v46  ;;  %v149_v23 = vld [vmem:[%s148_s17] sm:$0x1]  ;;  %s156_s18 = scalar_lea.vmem [#allocation8], %s2686_s14  ;;  %s2692_s4 = sld [smem:[#allocation4 + $0x86]] }
  0x75   :  { %3163 = vmatpush3.bf16.msra.mxu1 %v3752_v13  ;;  %150 = vst [vmem:[#allocation2 + $0x11] sm:$0x1] %v149_v23  ;;  %s160_s3 = scalar_lea.vmem [#allocation8], %s2687_s19  ;;  %s168_s25 = scalar_lea.vmem [#allocation8], %s2689_s6 }
  0x76   :  { %3170 = vmatprep.subr.bf16.mxu1 %v3572_v3  ;;  %s164_s21 = scalar_lea.vmem [#allocation8], %s2688_s20  ;;  %s172_s26 = scalar_lea.vmem [#allocation8], %s2690_s22 }
  0x77   :  { %v276_v19 = vld [vmem:[#allocation2] sm:$0xff]  ;;  %s2693_s13 = sld [smem:[#allocation4 + $0x7]] }
  0x78   :  { %2888 = vmatmul.mubr.f32.vlgmr.msra.gmra.mrb[2].mxu1 %v3574_v6  ;;  %s2694_s1 = sld [smem:[#allocation4 + $0x87]] }
  0x79   :  { %3172 = vmatpush3.bf16.msra.mxu1 %v3727_v4  ;;  %2909 = vmatprep.mubr.msk.f32.mxu1 %vm3573_vm0, %v3574_v6  ;;  %s176_s11 = scalar_lea.vmem [#allocation8], %s2691_s30 }
  0x7a   :  { %3173 = vmatprep.subr.bf16.mxu1 %v3572_v3  ;;  %s180_s12 = scalar_lea.vmem [#allocation8], %s2692_s4 }
  0x7b   :  { %v559_v52 = vld [vmem:[#allocation2 + $0x8] sm:$0xff] }
  0x7d   :  { %3175 = vmatpush3.bf16.msra.mxu1 %v3743_v7  ;;  %s184_s28 = scalar_lea.vmem [#allocation8], %s2693_s13 }
  0x7e   :  { %3182 = vmatprep.subr.bf16.mxu1 %v3572_v3  ;;  %s188_s15 = scalar_lea.vmem [#allocation8], %s2694_s1 }
 0x143   :  { %v3766_v16 = vpop.f32.mrb[0].mxu1 }
 0x144   :  { %v2878_v17 = vpop.f32.mrb[1].mxu1  ;;  %v273_v48 = vadd.f32 %v3806_v47, %v3766_v16 }
 0x14b   :  { %v347_v20 = vpop.f32.mrb[2].mxu1 }
 0x14c   :  { %v351_v21 = vadd.f32 %v347_v20, %v276_v19  ;;  %v2889_v22 = vpop.f32.mrb[3].mxu1 }
 0x14d   :  { %v145_v22 = vld [vmem:[%s144_s16] sm:$0x1] }
 0x14e   :  { %3345 = vtanh.f32 %v351_v21  ;;  %146 = vst [vmem:[#allocation2 + $0x10] sm:$0x1] %v145_v22 }
 0x158   :  { %v3346_v26 = vpop.eup %3345 }
 0x159   :  { %v353_v28 = vmul.f32 %v3346_v26, %v3768_v25 }
 0x15b   :  { %v354_v29 = vadd.f32 %v353_v28, %v3770_v27 }
 0x15d   :  { %357 = vrot.lane.b32.xlu0 %v354_v29, %s3576_s27  ;;  %v355_v32 = vmul.f32 0.0, %v354_v29 }
 0x1cf   :  { %v358_v30 = vpop.permute.xlu0 %357 }
 0x1d0   :  { %v360_v31 = vmul.f32 %v358_v30, %v354_v29 }
 0x1d2   :  { %362 = vrot.lane.b32.xlu0 %v360_v31, %s3577_s29 }
 0x244   :  { %v363_v33 = vpop.permute.xlu0 %362 }
 0x245   :  { %v3776_v34 = vadd.f32 %v363_v33, %v355_v32 }
 0x247   :  { %3347 = vtanh.f32 %v3776_v34 }
 0x251   :  { %v3348_v41 = vpop.eup %3347 }
 0x252   :  { %368 = vrot.lane.b32.xlu1 %v3348_v41, %s3576_s27 }
 0x2c4   :  { %v369_v42 = vpop.permute.xlu1 %368 }
 0x2c5   :  { %v371_v43 = vmul.f32 %v369_v42, %v354_v29  ;;  %v842_v29 = vld [vmem:[#allocation2 + $0x10] sm:$0xff] }
 0x2c7   :  { %377 = vrot.lane.b32.xlu1 %v371_v43, %s3577_s29 }
 0x339   :  { %v378_v44 = vpop.permute.xlu1 %377 }
 0x33a   :  { %2899 = vmatmul.mubr.msk.f32.vlgmr.msra.gmra.mrb[0].mxu0 %vm202_vm4, %v378_v44 }
 0x33b   :  { %3178 = vmatpush3.bf16.msra.mxu0 %v3747_v10  ;;  %2920 = vmatprep.mubr.msk.f32.mxu0 %vm3573_vm0, %v3574_v6 }
 0x33c   :  { %3179 = vmatprep.subr.bf16.mxu0 %v3572_v3 }
 0x33f   :  { %3181 = vmatpush3.bf16.msra.mxu0 %v3752_v13 }
 0x340   :  { %3188 = vmatprep.subr.bf16.mxu0 %v3572_v3 }
 0x342   :  { %2921 = vmatmul.mubr.msk.f32.vlgmr.msra.gmra.mrb[2].mxu0 %vm202_vm4, %v378_v44 }
 0x343   :  { %3190 = vmatpush3.bf16.msra.mxu0 %v3727_v4  ;;  %2942 = vmatprep.mubr.msk.f32.mxu0 %vm3573_vm0, %v3574_v6 }
 0x344   :  { %3191 = vmatprep.subr.bf16.mxu0 %v3572_v3 }
 0x347   :  { %3193 = vmatpush3.bf16.msra.mxu0 %v3743_v7 }
 0x348   :  { %3200 = vmatprep.subr.bf16.mxu0 %v3572_v3 }
 0x40d   :  { %v447_v49 = vpop.f32.mrb[0].mxu0 }
 0x40e   :  { %v448_v50 = vadd.f32 %v447_v49, %v273_v48  ;;  %v2900_v51 = vpop.f32.mrb[1].mxu0 }
 0x410   :  { %3349 = vtanh.f32 %v448_v50 }
 0x415   :  { %v630_v53 = vpop.f32.mrb[2].mxu0 }
 0x416   :  { %v634_v54 = vadd.f32 %v630_v53, %v559_v52  ;;  %v2922_v55 = vpop.f32.mrb[3].mxu0 }
 0x418   :  { %3351 = vtanh.f32 %v634_v54 }
 0x41a   :  { %v3350_v56 = vpop.eup %3349 }
 0x41b   :  { %v452_v57 = vmul.f32 %v3350_v56, %v3768_v25 }
 0x41d   :  { %v453_v58 = vadd.f32 %v452_v57, %v3770_v27 }
 0x41f   :  { %456 = vrot.lane.b32.xlu0 %v453_v58, %s3576_s27  ;;  %v454_v2 = vmul.f32 0.0, %v453_v58 }
 0x422   :  { %v3352_v59 = vpop.eup %3351 }
 0x423   :  { %v636_v60 = vmul.f32 %v3352_v59, %v3768_v25 }
 0x425   :  { %v637_v61 = vadd.f32 %v636_v60, %v3770_v27  ;;  %v153_v60 = vld [vmem:[%s152_s0] sm:$0x1]  ;;  %s3578_s0 = smov 96  }
 0x426   :  { %154 = vst [vmem:[#allocation2 + $0x18] sm:$0x1] %v153_v60 }
 0x427   :  { %640 = vrot.lane.b32.xlu1 %v637_v61, %s3576_s27  ;;  %v638_v9 = vmul.f32 %v637_v61, %v3776_v34 }
 0x491   :  { %v457_v62 = vpop.permute.xlu0 %456 }
 0x492   :  { %v459_v63 = vmul.f32 %v457_v62, %v453_v58 }
 0x494   :  { %461 = vrot.lane.b32.xlu0 %v459_v63, %s3577_s29 }
 0x499   :  { %v641_v0 = vpop.permute.xlu1 %640 }
 0x49a   :  { %v643_v1 = vmul.f32 %v641_v0, %v637_v61 }
 0x49c   :  { %645 = vrot.lane.b32.xlu1 %v643_v1, %s3577_s29 }
 0x506   :  { %v462_v5 = vpop.permute.xlu0 %461 }
 0x507   :  { %v3818_v8 = vadd.f32 %v462_v5, %v454_v2 }
 0x509   :  { %3353 = vtanh.f32 %v3818_v8 }
 0x50e   :  { %v646_v11 = vpop.permute.xlu1 %645 }
 0x50f   :  { %v3822_v12 = vadd.f32 %v646_v11, %v638_v9 }
 0x511   :  { %3355 = vtanh.f32 %v3822_v12 }
 0x513   :  { %v3354_v14 = vpop.eup %3353 }
 0x514   :  { %467 = vrot.lane.b32.xlu0 %v3354_v14, %s3576_s27 }
 0x51b   :  { %v3356_v15 = vpop.eup %3355 }
 0x51c   :  { %651 = vrot.lane.b32.xlu1 %v3356_v15, %s3576_s27 }
 0x586   :  { %v468_v16 = vpop.permute.xlu0 %467 }
 0x587   :  { %v470_v17 = vmul.f32 %v468_v16, %v453_v58 }
 0x589   :  { %472 = vrot.lane.b32.xlu0 %v470_v17, %s3577_s29 }
 0x58e   :  { %v652_v18 = vpop.permute.xlu1 %651 }
 0x58f   :  { %v654_v19 = vmul.f32 %v652_v18, %v637_v61  ;;  %v157_v61 = vld [vmem:[%s156_s18] sm:$0x1] }
 0x590   :  { %158 = vst [vmem:[#allocation2 + $0x19] sm:$0x1] %v157_v61 }
 0x591   :  { %660 = vrot.lane.b32.xlu1 %v654_v19, %s3577_s29 }
 0x597   :  { %v1125_v1 = vld [vmem:[#allocation2 + $0x18] sm:$0xff] }
 0x5fb   :  { %v473_v20 = vpop.permute.xlu0 %472 }
 0x5fc   :  { %475 = vst.msk [vmem:[#allocation3] sm:$0xff] %vm202_vm4, %v473_v20  ;;  %2910 = vmatmul.mubr.msk.f32.vlgmr.msra.gmra.mrb[4].mxu1 %vm202_vm4, %v473_v20 }
 0x5fd   :  { %3184 = vmatpush3.bf16.msra.mxu1 %v3779_v38  ;;  %2931 = vmatprep.mubr.msk.f32.mxu1 %vm3573_vm0, %v3574_v6 }
 0x5fe   :  { %3185 = vmatprep.subr.bf16.mxu1 %v3572_v3 }
 0x601   :  { %3187 = vmatpush3.bf16.msra.mxu1 %v3782_v40 }
 0x602   :  { %3194 = vmatprep.subr.bf16.mxu1 %v3572_v3 }
 0x603   :  { %v661_v21 = vpop.permute.xlu1 %660 }
 0x604   :  { %2932 = vmatmul.mubr.msk.f32.vlgmr.msra.gmra.mrb[4].mxu1 %vm202_vm4, %v661_v21 }
 0x605   :  { %3196 = vmatpush3.bf16.msra.mxu1 %v3747_v10  ;;  %2953 = vmatprep.mubr.msk.f32.mxu1 %vm3573_vm0, %v3574_v6 }
 0x606   :  { %3197 = vmatprep.subr.bf16.mxu1 %v3572_v3 }
 0x609   :  { %3199 = vmatpush3.bf16.msra.mxu1 %v3752_v13 }
 0x60a   :  { %3206 = vmatprep.subr.bf16.mxu1 %v3572_v3 }
 0x60c   :  { %2954 = vmatmul.mubr.msk.f32.vlgmr.msra.gmra.mrb[6].mxu1 %vm202_vm4, %v661_v21 }
 0x60d   :  { %3208 = vmatpush3.bf16.msra.mxu1 %v3727_v4  ;;  %2975 = vmatprep.mubr.msk.f32.mxu1 %vm3573_vm0, %v3574_v6 }
 0x60e   :  { %3209 = vmatprep.subr.bf16.mxu1 %v3572_v3 }
 0x611   :  { %3211 = vmatpush3.bf16.msra.mxu1 %v3743_v7 }
 0x612   :  { %3218 = vmatprep.subr.bf16.mxu1 %v3572_v3 }
 0x6d7   :  { %v730_v24 = vpop.f32.mrb[4].mxu1 }
 0x6d8   :  { %v3306_v26 = vadd.f32 %v3806_v47, %v730_v24  ;;  %v2933_v28 = vpop.f32.mrb[5].mxu1 }
 0x6da   :  { %3357 = vtanh.f32 %v3306_v26 }
 0x6df   :  { %v913_v30 = vpop.f32.mrb[6].mxu1 }
 0x6e0   :  { %v917_v31 = vadd.f32 %v913_v30, %v842_v29  ;;  %v2955_v32 = vpop.f32.mrb[7].mxu1 }
 0x6e2   :  { %3359 = vtanh.f32 %v917_v31 }
 0x6e4   :  { %v3358_v33 = vpop.eup %3357 }
 0x6e5   :  { %v735_v34 = vmul.f32 %v3358_v33, %v3768_v25 }
 0x6e7   :  { %v736_v35 = vadd.f32 %v735_v34, %v3770_v27 }
 0x6e9   :  { %739 = vrot.lane.b32.xlu0 %v736_v35, %s3576_s27  ;;  %v737_v45 = vmul.f32 %v736_v35, %v3818_v8 }
 0x6ec   :  { %v3360_v36 = vpop.eup %3359 }
 0x6ed   :  { %v919_v37 = vmul.f32 %v3360_v36, %v3768_v25 }
 0x6ef   :  { %v920_v39 = vadd.f32 %v919_v37, %v3770_v27  ;;  %v161_v37 = vld [vmem:[%s160_s3] sm:$0x1] }
 0x6f0   :  { %162 = vst [vmem:[#allocation2 + $0x20] sm:$0x1] %v161_v37 }
 0x6f1   :  { %923 = vrot.lane.b32.xlu1 %v920_v39, %s3576_s27  ;;  %v921_v49 = vmul.f32 %v920_v39, %v3822_v12 }
 0x75b   :  { %v740_v41 = vpop.permute.xlu0 %739 }
 0x75c   :  { %v742_v42 = vmul.f32 %v740_v41, %v736_v35 }
 0x75e   :  { %744 = vrot.lane.b32.xlu0 %v742_v42, %s3577_s29 }
 0x763   :  { %v924_v43 = vpop.permute.xlu1 %923 }
 0x764   :  { %v926_v44 = vmul.f32 %v924_v43, %v920_v39 }
 0x766   :  { %928 = vrot.lane.b32.xlu1 %v926_v44, %s3577_s29 }
 0x7d0   :  { %v745_v46 = vpop.permute.xlu0 %744 }
 0x7d1   :  { %v3861_v48 = vadd.f32 %v745_v46, %v737_v45 }
 0x7d3   :  { %3361 = vtanh.f32 %v3861_v48 }
 0x7d8   :  { %v929_v50 = vpop.permute.xlu1 %928 }
 0x7d9   :  { %v3865_v51 = vadd.f32 %v929_v50, %v921_v49 }
 0x7db   :  { %3363 = vtanh.f32 %v3865_v51 }
 0x7dd   :  { %v3362_v52 = vpop.eup %3361 }
 0x7de   :  { %750 = vrot.lane.b32.xlu0 %v3362_v52, %s3576_s27 }
 0x7e5   :  { %v3364_v53 = vpop.eup %3363 }
 0x7e6   :  { %934 = vrot.lane.b32.xlu1 %v3364_v53, %s3576_s27 }
 0x850   :  { %v751_v54 = vpop.permute.xlu0 %750 }
 0x851   :  { %v753_v55 = vmul.f32 %v751_v54, %v736_v35 }
 0x853   :  { %755 = vrot.lane.b32.xlu0 %v753_v55, %s3577_s29 }
 0x858   :  { %v935_v56 = vpop.permute.xlu1 %934 }
 0x859   :  { %v937_v57 = vmul.f32 %v935_v56, %v920_v39  ;;  %v165_v39 = vld [vmem:[%s164_s21] sm:$0x1] }
 0x85a   :  { %166 = vst [vmem:[#allocation2 + $0x21] sm:$0x1] %v165_v39 }
 0x85b   :  { %943 = vrot.lane.b32.xlu1 %v937_v57, %s3577_s29 }
 0x861   :  { %v1408_v43 = vld [vmem:[#allocation2 + $0x20] sm:$0xff] }
 0x8c5   :  { %v756_v58 = vpop.permute.xlu0 %755 }
 0x8c6   :  { %758 = vst.msk [vmem:[#allocation3 + $0x8] sm:$0xff] %vm202_vm4, %v756_v58  ;;  %2943 = vmatmul.mubr.msk.f32.vlgmr.msra.gmra.mrb[4].mxu0 %vm202_vm4, %v756_v58 }
 0x8c7   :  { %3202 = vmatpush3.bf16.msra.mxu0 %v3779_v38  ;;  %2964 = vmatprep.mubr.msk.f32.mxu0 %vm3573_vm0, %v3574_v6 }
 0x8c8   :  { %3203 = vmatprep.subr.bf16.mxu0 %v3572_v3 }
 0x8cb   :  { %3205 = vmatpush3.bf16.msra.mxu0 %v3782_v40 }
 0x8cc   :  { %3212 = vmatprep.subr.bf16.mxu0 %v3572_v3 }
 0x8cd   :  { %v944_v59 = vpop.permute.xlu1 %943 }
 0x8ce   :  { %2965 = vmatmul.mubr.msk.f32.vlgmr.msra.gmra.mrb[4].mxu0 %vm202_vm4, %v944_v59 }
 0x8cf   :  { %3214 = vmatpush3.bf16.msra.mxu0 %v3747_v10  ;;  %2986 = vmatprep.mubr.msk.f32.mxu0 %vm3573_vm0, %v3574_v6 }
 0x8d0   :  { %3215 = vmatprep.subr.bf16.mxu0 %v3572_v3 }
 0x8d3   :  { %3217 = vmatpush3.bf16.msra.mxu0 %v3752_v13 }
 0x8d4   :  { %3224 = vmatprep.subr.bf16.mxu0 %v3572_v3 }
 0x8d6   :  { %2987 = vmatmul.mubr.msk.f32.vlgmr.msra.gmra.mrb[6].mxu0 %vm202_vm4, %v944_v59 }
 0x8d7   :  { %3226 = vmatpush3.bf16.msra.mxu0 %v3727_v4  ;;  %3008 = vmatprep.mubr.msk.f32.mxu0 %vm3573_vm0, %v3574_v6 }
 0x8d8   :  { %3227 = vmatprep.subr.bf16.mxu0 %v3572_v3 }
 0x8db   :  { %3229 = vmatpush3.bf16.msra.mxu0 %v3743_v7 }
 0x8dc   :  { %3236 = vmatprep.subr.bf16.mxu0 %v3572_v3 }
 0x9a1   :  { %v1013_v62 = vpop.f32.mrb[4].mxu0 }
 0x9a2   :  { %v3307_v63 = vadd.f32 %v3806_v47, %v1013_v62  ;;  %v2966_v0 = vpop.f32.mrb[5].mxu0 }
 0x9a4   :  { %3365 = vtanh.f32 %v3307_v63 }
 0x9a9   :  { %v1196_v2 = vpop.f32.mrb[6].mxu0 }
 0x9aa   :  { %v1200_v5 = vadd.f32 %v1196_v2, %v1125_v1  ;;  %v2988_v8 = vpop.f32.mrb[7].mxu0 }
 0x9ac   :  { %3367 = vtanh.f32 %v1200_v5 }
 0x9ae   :  { %v3366_v9 = vpop.eup %3365 }
 0x9af   :  { %v1018_v11 = vmul.f32 %v3366_v9, %v3768_v25 }
 0x9b1   :  { %v1019_v12 = vadd.f32 %v1018_v11, %v3770_v27 }
 0x9b3   :  { %1022 = vrot.lane.b32.xlu0 %v1019_v12, %s3576_s27  ;;  %v1020_v21 = vmul.f32 %v1019_v12, %v3861_v48 }
 0x9b6   :  { %v3368_v14 = vpop.eup %3367 }
 0x9b7   :  { %v1202_v15 = vmul.f32 %v3368_v14, %v3768_v25  ;;  %v173_v14 = vld [vmem:[%s172_s26] sm:$0x1] }
 0x9b8   :  { %174 = vst [vmem:[#allocation2 + $0x29] sm:$0x1] %v173_v14  ;;  %v1892_v14 = vld [vmem:[#allocation12 + $0x8] sm:$0xff] }
 0x9b9   :  { %v1203_v16 = vadd.f32 %v1202_v15, %v3770_v27 }
 0x9bb   :  { %1206 = vrot.lane.b32.xlu1 %v1203_v16, %s3576_s27  ;;  %v1204_v24 = vmul.f32 %v1203_v16, %v3865_v51 }
 0xa25   :  { %v1023_v17 = vpop.permute.xlu0 %1022 }
 0xa26   :  { %v1025_v18 = vmul.f32 %v1023_v17, %v1019_v12 }
 0xa28   :  { %1027 = vrot.lane.b32.xlu0 %v1025_v18, %s3577_s29 }
 0xa2d   :  { %v1207_v19 = vpop.permute.xlu1 %1206 }
 0xa2e   :  { %v1209_v20 = vmul.f32 %v1207_v19, %v1203_v16 }
 0xa30   :  { %1211 = vrot.lane.b32.xlu1 %v1209_v20, %s3577_s29 }
 0xa9a   :  { %v1028_v22 = vpop.permute.xlu0 %1027 }
 0xa9b   :  { %v3904_v23 = vadd.f32 %v1028_v22, %v1020_v21 }
 0xa9d   :  { %3369 = vtanh.f32 %v3904_v23 }
 0xaa2   :  { %v1212_v26 = vpop.permute.xlu1 %1211 }
 0xaa3   :  { %v3908_v28 = vadd.f32 %v1212_v26, %v1204_v24 }
 0xaa5   :  { %3371 = vtanh.f32 %v3908_v28 }
 0xaa7   :  { %v3370_v29 = vpop.eup %3369 }
 0xaa8   :  { %1033 = vrot.lane.b32.xlu0 %v3370_v29, %s3576_s27 }
 0xaaf   :  { %v3372_v30 = vpop.eup %3371 }
 0xab0   :  { %1217 = vrot.lane.b32.xlu1 %v3372_v30, %s3576_s27 }
 0xb1a   :  { %v1034_v31 = vpop.permute.xlu0 %1033 }
 0xb1b   :  { %v1036_v32 = vmul.f32 %v1034_v31, %v1019_v12  ;;  %v169_v12 = vld [vmem:[%s168_s25] sm:$0x1] }
 0xb1c   :  { %170 = vst [vmem:[#allocation2 + $0x28] sm:$0x1] %v169_v12  ;;  %v1891_v12 = vld [vmem:[#allocation12] sm:$0xff] }
 0xb1d   :  { %1038 = vrot.lane.b32.xlu0 %v1036_v32, %s3577_s29 }
 0xb22   :  { %v1218_v33 = vpop.permute.xlu1 %1217 }
 0xb23   :  { %v1220_v34 = vmul.f32 %v1218_v33, %v1203_v16  ;;  %v1691_v18 = vld [vmem:[#allocation2 + $0x28] sm:$0xff] }
 0xb25   :  { %1226 = vrot.lane.b32.xlu1 %v1220_v34, %s3577_s29 }
 0xb8f   :  { %v1039_v35 = vpop.permute.xlu0 %1038 }
 0xb90   :  { %1041 = vst.msk [vmem:[#allocation3 + $0x10] sm:$0xff] %vm202_vm4, %v1039_v35  ;;  %2976 = vmatmul.mubr.msk.f32.vlgmr.msra.gmra.mrb[8].mxu1 %vm202_vm4, %v1039_v35 }
 0xb91   :  { %3220 = vmatpush3.bf16.msra.mxu1 %v3779_v38  ;;  %2997 = vmatprep.mubr.msk.f32.mxu1 %vm3573_vm0, %v3574_v6 }
 0xb92   :  { %3221 = vmatprep.subr.bf16.mxu1 %v3572_v3 }
 0xb95   :  { %3223 = vmatpush3.bf16.msra.mxu1 %v3782_v40 }
 0xb96   :  { %3230 = vmatprep.subr.bf16.mxu1 %v3572_v3 }
 0xb97   :  { %v1227_v36 = vpop.permute.xlu1 %1226 }
 0xb98   :  { %2998 = vmatmul.mubr.msk.f32.vlgmr.msra.gmra.mrb[8].mxu1 %vm202_vm4, %v1227_v36 }
 0xb99   :  { %3232 = vmatpush3.bf16.msra.mxu1 %v3747_v10  ;;  %3019 = vmatprep.mubr.msk.f32.mxu1 %vm3573_vm0, %v3574_v6 }
 0xb9a   :  { %3233 = vmatprep.subr.bf16.mxu1 %v3572_v3 }
 0xb9d   :  { %3235 = vmatpush3.bf16.msra.mxu1 %v3752_v13 }
 0xb9e   :  { %3242 = vmatprep.subr.bf16.mxu1 %v3572_v3 }
 0xba0   :  { %3020 = vmatmul.mubr.msk.f32.vlgmr.msra.gmra.mrb[10].mxu1 %vm202_vm4, %v1227_v36 }
 0xba1   :  { %3244 = vmatpush3.bf16.msra.mxu1 %v3727_v4  ;;  %3041 = vmatprep.mubr.msk.f32.mxu1 %vm3573_vm0, %v3574_v6 }
 0xba2   :  { %3245 = vmatprep.subr.bf16.mxu1 %v3572_v3 }
 0xba5   :  { %3247 = vmatpush3.bf16.msra.mxu1 %v3743_v7 }
 0xba6   :  { %3254 = vmatprep.subr.bf16.mxu1 %v3572_v3 }
 0xc6b   :  { %v1296_v41 = vpop.f32.mrb[8].mxu1 }
 0xc6c   :  { %v3308_v4 = vadd.f32 %v3806_v47, %v1296_v41  ;;  %v2999_v42 = vpop.f32.mrb[9].mxu1 }
 0xc6e   :  { %3373 = vtanh.f32 %v3308_v4 }
 0xc73   :  { %v1479_v44 = vpop.f32.mrb[10].mxu1 }
 0xc74   :  { %v1483_v45 = vadd.f32 %v1479_v44, %v1408_v43  ;;  %v3021_v46 = vpop.f32.mrb[11].mxu1 }
 0xc76   :  { %3375 = vtanh.f32 %v1483_v45 }
 0xc78   :  { %v3374_v7 = vpop.eup %3373 }
 0xc79   :  { %v1301_v48 = vmul.f32 %v3374_v7, %v3768_v25 }
 0xc7b   :  { %v1302_v49 = vadd.f32 %v1301_v48, %v3770_v27 }
 0xc7d   :  { %1305 = vrot.lane.b32.xlu0 %v1302_v49, %s3576_s27  ;;  %v1303_v57 = vmul.f32 %v1302_v49, %v3904_v23 }
 0xc80   :  { %v3376_v50 = vpop.eup %3375 }
 0xc81   :  { %v1485_v51 = vmul.f32 %v3376_v50, %v3768_v25 }
 0xc83   :  { %v1486_v52 = vadd.f32 %v1485_v51, %v3770_v27 }
 0xc85   :  { %1489 = vrot.lane.b32.xlu1 %v1486_v52, %s3576_s27  ;;  %v1487_v60 = vmul.f32 %v1486_v52, %v3908_v28 }
 0xcef   :  { %v1306_v53 = vpop.permute.xlu0 %1305 }
 0xcf0   :  { %v1308_v54 = vmul.f32 %v1306_v53, %v1302_v49 }
 0xcf2   :  { %1310 = vrot.lane.b32.xlu0 %v1308_v54, %s3577_s29 }
 0xcf7   :  { %v1490_v55 = vpop.permute.xlu1 %1489 }
 0xcf8   :  { %v1492_v56 = vmul.f32 %v1490_v55, %v1486_v52 }
 0xcfa   :  { %1494 = vrot.lane.b32.xlu1 %v1492_v56, %s3577_s29 }
 0xd64   :  { %v1311_v58 = vpop.permute.xlu0 %1310 }
 0xd65   :  { %v3947_v59 = vadd.f32 %v1311_v58, %v1303_v57 }
 0xd67   :  { %3377 = vtanh.f32 %v3947_v59 }
 0xd6c   :  { %v1495_v61 = vpop.permute.xlu1 %1494 }
 0xd6d   :  { %v3951_v62 = vadd.f32 %v1495_v61, %v1487_v60 }
 0xd6f   :  { %3379 = vtanh.f32 %v3951_v62 }
 0xd71   :  { %v3378_v63 = vpop.eup %3377 }
 0xd72   :  { %1316 = vrot.lane.b32.xlu0 %v3378_v63, %s3576_s27 }
 0xd79   :  { %v3380_v0 = vpop.eup %3379 }
 0xd7a   :  { %1500 = vrot.lane.b32.xlu1 %v3380_v0, %s3576_s27 }
 0xde4   :  { %v1317_v1 = vpop.permute.xlu0 %1316 }
 0xde5   :  { %v1319_v2 = vmul.f32 %v1317_v1, %v1302_v49  ;;  %v177_v49 = vld [vmem:[%s176_s11] sm:$0x1] }
 0xde6   :  { %178 = vst [vmem:[#allocation2 + $0x30] sm:$0x1] %v177_v49 }
 0xde7   :  { %1321 = vrot.lane.b32.xlu0 %v1319_v2, %s3577_s29 }
 0xdec   :  { %v1501_v5 = vpop.permute.xlu1 %1500 }
 0xded   :  { %v1503_v8 = vmul.f32 %v1501_v5, %v1486_v52 }
 0xdef   :  { %1509 = vrot.lane.b32.xlu1 %v1503_v8, %s3577_s29 }
 0xe59   :  { %v1322_v9 = vpop.permute.xlu0 %1321 }
 0xe5a   :  { %1324 = vst.msk [vmem:[#allocation3 + $0x18] sm:$0xff] %vm202_vm4, %v1322_v9  ;;  %3009 = vmatmul.mubr.msk.f32.vlgmr.msra.gmra.mrb[8].mxu0 %vm202_vm4, %v1322_v9 }
 0xe5b   :  { %3238 = vmatpush3.bf16.msra.mxu0 %v3779_v38  ;;  %3030 = vmatprep.mubr.msk.f32.mxu0 %vm3573_vm0, %v3574_v6 }
 0xe5c   :  { %3239 = vmatprep.subr.bf16.mxu0 %v3572_v3 }
 0xe5f   :  { %3241 = vmatpush3.bf16.msra.mxu0 %v3782_v40 }
 0xe60   :  { %3248 = vmatprep.subr.bf16.mxu0 %v3572_v3 }
 0xe61   :  { %v1510_v11 = vpop.permute.xlu1 %1509 }
 0xe62   :  { %3031 = vmatmul.mubr.msk.f32.vlgmr.msra.gmra.mrb[8].mxu0 %vm202_vm4, %v1510_v11 }
 0xe63   :  { %3250 = vmatpush3.bf16.msra.mxu0 %v3747_v10  ;;  %3052 = vmatprep.mubr.msk.f32.mxu0 %vm3573_vm0, %v3574_v6 }
 0xe64   :  { %3251 = vmatprep.subr.bf16.mxu0 %v3572_v3 }
 0xe67   :  { %3253 = vmatpush3.bf16.msra.mxu0 %v3752_v13 }
 0xe68   :  { %3260 = vmatprep.subr.bf16.mxu0 %v3572_v3 }
 0xe6a   :  { %3053 = vmatmul.mubr.msk.f32.vlgmr.msra.gmra.mrb[10].mxu0 %vm202_vm4, %v1510_v11 }
 0xe6b   :  { %3074 = vmatprep.mubr.msk.f32.mxu0 %vm3573_vm0, %v3574_v6 }
 0xf35   :  { %v1579_v15 = vpop.f32.mrb[8].mxu0 }
 0xf36   :  { %v3309_v16 = vadd.f32 %v3806_v47, %v1579_v15  ;;  %v3032_v17 = vpop.f32.mrb[9].mxu0  ;;  %v1893_v15 = vld [vmem:[#allocation12 + $0x10] sm:$0xff] }
 0xf37   :  { %v1894_v17 = vld [vmem:[#allocation12 + $0x18] sm:$0xff] }
 0xf38   :  { %3381 = vtanh.f32 %v3309_v16  ;;  %v3261_v16 = vpack.c.bf16 %v1892_v14, %v1891_v12 }
 0xf3a   :  { %3262 = vmatpush3.bf16.msra.mxu0 %v3261_v16 }
 0xf3b   :  { %3263 = vmatprep.subr.bf16.mxu0 %v3572_v3 }
 0xf3d   :  { %v1762_v19 = vpop.f32.mrb[10].mxu0 }
 0xf3e   :  { %v1766_v20 = vadd.f32 %v1762_v19, %v1691_v18  ;;  %v3054_v21 = vpop.f32.mrb[11].mxu0  ;;  %v3264_v19 = vpack.c.bf16 %v1894_v17, %v1893_v15 }
 0xf40   :  { %3383 = vtanh.f32 %v1766_v20  ;;  %3265 = vmatpush3.bf16.msra.mxu0 %v3264_v19 }
 0xf41   :  { %3272 = vmatprep.subr.bf16.mxu0 %v3572_v3 }
 0xf42   :  { %v3382_v22 = vpop.eup %3381 }
 0xf43   :  { %v1584_v23 = vmul.f32 %v3382_v22, %v3768_v25 }
 0xf45   :  { %v1585_v24 = vadd.f32 %v1584_v23, %v3770_v27 }
 0xf47   :  { %1588 = vrot.lane.b32.xlu0 %v1585_v24, %s3576_s27  ;;  %v1586_v34 = vmul.f32 %v1585_v24, %v3947_v59 }
 0xf4a   :  { %v3384_v26 = vpop.eup %3383 }
 0xf4b   :  { %v1768_v28 = vmul.f32 %v3384_v26, %v3768_v25 }
 0xf4d   :  { %v1769_v29 = vadd.f32 %v1768_v28, %v3770_v27  ;;  %v2258_v28 = vld [vmem:[#allocation9] sm:$0xff] }
 0xf4f   :  { %1772 = vrot.lane.b32.xlu1 %v1769_v29, %s3576_s27  ;;  %v1770_v37 = vmul.f32 %v1769_v29, %v3951_v62 }
 0xfb9   :  { %v1589_v30 = vpop.permute.xlu0 %1588 }
 0xfba   :  { %v1591_v31 = vmul.f32 %v1589_v30, %v1585_v24 }
 0xfbc   :  { %1593 = vrot.lane.b32.xlu0 %v1591_v31, %s3577_s29  ;;  %v2260_v31 = vld [vmem:[#allocation9 + $0x10] sm:$0xff] }
 0xfc1   :  { %v1773_v32 = vpop.permute.xlu1 %1772 }
 0xfc2   :  { %v1775_v33 = vmul.f32 %v1773_v32, %v1769_v29  ;;  %v2261_v32 = vld [vmem:[#allocation9 + $0x18] sm:$0xff] }
 0xfc4   :  { %1777 = vrot.lane.b32.xlu1 %v1775_v33, %s3577_s29 }
0x102e   :  { %v1594_v35 = vpop.permute.xlu0 %1593 }
0x102f   :  { %v3986_v36 = vadd.f32 %v1594_v35, %v1586_v34  ;;  %v2465_v34 = vld [vmem:[#allocation14] sm:$0xff]  ;;  %v2466_v35 = vld [vmem:[#allocation14 + $0x8] sm:$0xff] }
0x1031   :  { %3385 = vtanh.f32 %v3986_v36 }
0x1036   :  { %v1778_v39 = vpop.permute.xlu1 %1777 }
0x1037   :  { %v3990_v41 = vadd.f32 %v1778_v39, %v1770_v37  ;;  %v2468_v37 = vld [vmem:[#allocation14 + $0x18] sm:$0xff] }
0x1039   :  { %3387 = vtanh.f32 %v3990_v41 }
0x103b   :  { %v3386_v4 = vpop.eup %3385 }
0x103c   :  { %1599 = vrot.lane.b32.xlu0 %v3386_v4, %s3576_s27  ;;  %v2458_v4 = vld [vmem:[#allocation3 + $0x8] sm:$0xff] }
0x1043   :  { %v3388_v42 = vpop.eup %3387 }
0x1044   :  { %1783 = vrot.lane.b32.xlu1 %v3388_v42, %s3576_s27  ;;  %v2459_v42 = vld [vmem:[#allocation3 + $0x10] sm:$0xff] }
0x10ae   :  { %v1600_v43 = vpop.permute.xlu0 %1599 }
0x10af   :  { %v1602_v44 = vmul.f32 %v1600_v43, %v1585_v24  ;;  %v2460_v43 = vld [vmem:[#allocation3 + $0x18] sm:$0xff] }
0x10b1   :  { %1604 = vrot.lane.b32.xlu0 %v1602_v44, %s3577_s29 }
0x10b6   :  { %v1784_v45 = vpop.permute.xlu1 %1783 }
0x10b7   :  { %v1786_v46 = vmul.f32 %v1784_v45, %v1769_v29  ;;  %v2259_v29 = vld [vmem:[#allocation9 + $0x8] sm:$0xff] }
0x10b8   :  { %v3285_v30 = vpack.c.bf16 %v2259_v29, %v2258_v28 }
0x10b9   :  { %1792 = vrot.lane.b32.xlu1 %v1786_v46, %s3577_s29  ;;  %v185_v46 = vld [vmem:[%s184_s28] sm:$0x1] }
0x1123   :  { %v1605_v7 = vpop.permute.xlu0 %1604 }
0x1124   :  { %1607 = vst.msk [vmem:[#allocation3 + $0x20] sm:$0xff] %vm202_vm4, %v1605_v7  ;;  %3042 = vmatmul.mubr.msk.f32.vlgmr.msra.gmra.mrb[12].mxu1 %vm202_vm4, %v1605_v7  ;;  %v189_v7 = vld [vmem:[%s188_s15] sm:$0x1] }
0x1125   :  { %3256 = vmatpush3.bf16.msra.mxu1 %v3779_v38  ;;  %3063 = vmatprep.mubr.msk.f32.mxu1 %vm3573_vm0, %v3574_v6 }
0x1126   :  { %3257 = vmatprep.subr.bf16.mxu1 %v3572_v3 }
0x1129   :  { %3259 = vmatpush3.bf16.msra.mxu1 %v3782_v40 }
0x112a   :  { %3266 = vmatprep.subr.bf16.mxu1 %v3572_v3 }
0x112b   :  { %v1793_v48 = vpop.permute.xlu1 %1792  ;;  %v2461_v44 = vld [vmem:[#allocation3 + $0x20] sm:$0xff] }
0x112c   :  { %3064 = vmatmul.mubr.msk.f32.vlgmr.msra.gmra.mrb[12].mxu1 %vm202_vm4, %v1793_v48 }
0x112d   :  { %3268 = vmatpush3.bf16.msra.mxu1 %v3747_v10  ;;  %3085 = vmatprep.mubr.msk.f32.mxu1 %vm3573_vm0, %v3574_v6  ;;  %v181_v10 = vld [vmem:[%s180_s12] sm:$0x1] }
0x112e   :  { %3269 = vmatprep.subr.bf16.mxu1 %v3572_v3  ;;  %182 = vst [vmem:[#allocation2 + $0x31] sm:$0x1] %v181_v10 }
0x1131   :  { %3271 = vmatpush3.bf16.msra.mxu1 %v3752_v13 }
0x1132   :  { %3278 = vmatprep.subr.bf16.mxu1 %v3572_v3 }
0x1134   :  { %3086 = vmatmul.mubr.msk.f32.vlgmr.msra.gmra.mrb[14].mxu1 %vm202_vm4, %v1793_v48  ;;  %v4064_v48 = vld [vmem:[%s4146_s5] ss:$0 sm:$0xff] }
0x1135   :  { %3107 = vmatprep.mubr.msk.f32.mxu1 %vm3573_vm0, %v3574_v6  ;;  %v1974_v13 = vld [vmem:[#allocation2 + $0x30] sm:$0xff]  ;;  %3280 = vmatpush3.bf16.msra.mxu1 %v3261_v16 }
0x1136   :  { %3281 = vmatprep.subr.bf16.mxu1 %v3572_v3 }
0x1139   :  { %3283 = vmatpush3.bf16.msra.mxu1 %v3264_v19 }
0x113a   :  { %3290 = vmatprep.subr.bf16.mxu1 %v3572_v3 }
0x11ff   :  { %v1862_v50 = vpop.f32.mrb[12].mxu1 }
0x1200   :  { %v3310_v51 = vadd.f32 %v3806_v47, %v1862_v50  ;;  %v3065_v52 = vpop.f32.mrb[13].mxu1 }
0x1202   :  { %3389 = vtanh.f32 %v3310_v51 }
0x1207   :  { %v2045_v53 = vpop.f32.mrb[14].mxu1 }
0x1208   :  { %v2049_v54 = vadd.f32 %v2045_v53, %v1974_v13  ;;  %v3087_v55 = vpop.f32.mrb[15].mxu1 }
0x1209   :  { %v4070_v55 = vld [vmem:[%s4148_s7] ss:$0 sm:$0xff] }
0x120a   :  { %3391 = vtanh.f32 %v2049_v54 }
0x120c   :  { %v3390_v56 = vpop.eup %3389 }
0x120d   :  { %v1867_v57 = vmul.f32 %v3390_v56, %v3768_v25 }
0x120f   :  { %v1868_v58 = vadd.f32 %v1867_v57, %v3770_v27 }
0x1211   :  { %1871 = vrot.lane.b32.xlu0 %v1868_v58, %s3576_s27  ;;  %v1869_v1 = vmul.f32 %v1868_v58, %v3986_v36  ;;  %v4049_v36 = vld [vmem:[#allocation2 + $0x38] sm:$0xff] }
0x1212   :  { %186 = vst [vmem:[#allocation2 + $0x38] sm:$0x1] %v185_v46  ;;  %190 = vst [vmem:[#allocation2 + $0x39] sm:$0x1] %v189_v7 }
0x1214   :  { %v3392_v59 = vpop.eup %3391 }
0x1215   :  { %v2051_v60 = vmul.f32 %v3392_v59, %v3768_v25 }
0x1217   :  { %v2052_v61 = vadd.f32 %v2051_v60, %v3770_v27 }
0x1219   :  { %2055 = vrot.lane.b32.xlu1 %v2052_v61, %s3576_s27  ;;  %v2053_v8 = vmul.f32 %v2052_v61, %v3990_v41  ;;  %v2457_v41 = vld [vmem:[#allocation3] sm:$0xff]  ;;  %v2257_v51 = vld [vmem:[#allocation2 + $0x38] sm:$0xff] }
0x1283   :  { %v1872_v47 = vpop.permute.xlu0 %1871 }
0x1284   :  { %v1874_v62 = vmul.f32 %v1872_v47, %v1868_v58 }
0x1286   :  { %1876 = vrot.lane.b32.xlu0 %v1874_v62, %s3577_s29 }
0x128b   :  { %v2056_v63 = vpop.permute.xlu1 %2055 }
0x128c   :  { %v2058_v0 = vmul.f32 %v2056_v63, %v2052_v61 }
0x128e   :  { %2060 = vrot.lane.b32.xlu1 %v2058_v0, %s3577_s29 }
0x12f8   :  { %v1877_v2 = vpop.permute.xlu0 %1876 }
0x12f9   :  { %v4025_v5 = vadd.f32 %v1877_v2, %v1869_v1 }
0x12fb   :  { %3393 = vtanh.f32 %v4025_v5 }
0x1300   :  { %v2061_v9 = vpop.permute.xlu1 %2060 }
0x1301   :  { %v4029_v11 = vadd.f32 %v2061_v9, %v2053_v8 }
0x1303   :  { %3395 = vtanh.f32 %v4029_v11 }
0x1305   :  { %v3394_v18 = vpop.eup %3393 }
0x1306   :  { %1882 = vrot.lane.b32.xlu0 %v3394_v18, %s3576_s27 }
0x130d   :  { %v3396_v20 = vpop.eup %3395 }
0x130e   :  { %2066 = vrot.lane.b32.xlu1 %v3396_v20, %s3576_s27 }
0x1378   :  { %v1883_v21 = vpop.permute.xlu0 %1882 }
0x1379   :  { %v1885_v22 = vmul.f32 %v1883_v21, %v1868_v58 }
0x137b   :  { %1887 = vrot.lane.b32.xlu0 %v1885_v22, %s3577_s29 }
0x1380   :  { %v2067_v23 = vpop.permute.xlu1 %2066 }
0x1381   :  { %v2069_v24 = vmul.f32 %v2067_v23, %v2052_v61 }
0x1383   :  { %2075 = vrot.lane.b32.xlu1 %v2069_v24, %s3577_s29 }
0x13ed   :  { %v1888_v26 = vpop.permute.xlu0 %1887 }
0x13ee   :  { %1890 = vst.msk [vmem:[#allocation3 + $0x28] sm:$0xff] %vm202_vm4, %v1888_v26  ;;  %3075 = vmatmul.mubr.msk.f32.vlgmr.msra.gmra.mrb[12].mxu0 %vm202_vm4, %v1888_v26 }
0x13ef   :  { %3274 = vmatpush3.bf16.msra.mxu0 %v3779_v38  ;;  %3096 = vmatprep.mubr.msk.f32.mxu0 %vm3573_vm0, %v3574_v6  ;;  %v3288_v38 = vpack.c.bf16 %v2261_v32, %v2260_v31  ;;  %v3296_v6 = vpack.c.bf16 %v2466_v35, %v2465_v34  ;;  %v2354_v34 = vld [vmem:[#allocation11 + $0x8] sm:$0xff]  ;;  %v2355_v35 = vld [vmem:[#allocation11 + $0x10] sm:$0xff] }
0x13f0   :  { %3275 = vmatprep.subr.bf16.mxu0 %v3572_v3 }
0x13f3   :  { %3277 = vmatpush3.bf16.msra.mxu0 %v3782_v40  ;;  %v2467_v40 = vld [vmem:[#allocation14 + $0x10] sm:$0xff] }
0x13f4   :  { %3284 = vmatprep.subr.bf16.mxu0 %v3572_v3  ;;  %v3300_v39 = vpack.c.bf16 %v2468_v37, %v2467_v40 }
0x13f5   :  { %v2076_v33 = vpop.permute.xlu1 %2075  ;;  %v2462_v45 = vld [vmem:[#allocation3 + $0x28] sm:$0xff] }
0x13f6   :  { %3097 = vmatmul.mubr.msk.f32.vlgmr.msra.gmra.mrb[12].mxu0 %vm202_vm4, %v2076_v33 }
0x13f7   :  { %3286 = vmatpush3.bf16.msra.mxu0 %v3285_v30  ;;  %3118 = vmatprep.mubr.msk.f32.mxu0 %vm3573_vm0, %v4049_v36 }
0x13f8   :  { %3287 = vmatprep.subr.bf16.mxu0 %v3572_v3 }
0x13fb   :  { %3289 = vmatpush3.bf16.msra.mxu0 %v3288_v38  ;;  %v2356_v38 = vld [vmem:[#allocation11 + $0x18] sm:$0xff] }
0x13fc   :  { %3297 = vmatprep.subr.bf16.mxu0 %v3296_v6  ;;  %v3294_v40 = vpack.c.bf16 %v2356_v38, %v2355_v35 }
0x13fe   :  { %3119 = vmatmul.mubr.msk.f32.vlgmr.msra.gmra.mrb[14].mxu0 %vm202_vm4, %v2076_v33  ;;  %v2353_v33 = vld [vmem:[#allocation11] sm:$0xff] }
0x13ff   :  { %3299 = vmatpush3.bf16.msra.mxu0 %v3296_v6  ;;  %3140 = vmatprep.mubr.msk.f32.mxu0 %vm202_vm4, %v2457_v41 }
0x1400   :  { %3301 = vmatprep.subr.bf16.mxu0 %v3300_v39 }
0x1403   :  { %3303 = vmatpush3.bf16.msra.mxu0 %v3300_v39 }
0x1406   :  { %3141 = vmatmul.mubr.msk.f32.vlgmr.msra.gmra.mrb[16].mxu0 %vm202_vm4, %v2458_v4 }
0x1407   :  { %3143 = vmatprep.mubr.msk.f32.mxu0 %vm202_vm4, %v2459_v42 }
0x140a   :  { %3144 = vmatmul.mubr.msk.f32.gmra.mrb[18].mxu0 %vm202_vm4, %v2460_v43 }
0x140b   :  { %3146 = vmatprep.mubr.msk.f32.mxu0 %vm202_vm4, %v2461_v44 }
0x140e   :  { %3147 = vmatmul.mubr.msk.f32.gmra.mrb[20].mxu0 %vm202_vm4, %v2462_v45 }
0x14c9   :  { %v2145_v49 = vpop.f32.mrb[12].mxu0 }
0x14ca   :  { %v3311_v10 = vadd.f32 %v4064_v48, %v2145_v49  ;;  %v3098_v50 = vpop.f32.mrb[13].mxu0 }
0x14cc   :  { %3397 = vtanh.f32 %v3311_v10 }
0x14d1   :  { %v2328_v52 = vpop.f32.mrb[14].mxu0 }
0x14d2   :  { %v2332_v13 = vadd.f32 %v2328_v52, %v2257_v51  ;;  %v3120_v53 = vpop.f32.mrb[15].mxu0 }
0x14d4   :  { %3399 = vtanh.f32 %v2332_v13 }
0x14d6   :  { %v3398_v54 = vpop.eup %3397 }
0x14d7   :  { %v2150_v56 = vmul.f32 %v3398_v54, %v3768_v25 }
0x14d9   :  { %v3142_v57 = vpop.f32.mrb[16].mxu0  ;;  %v2151_v58 = vadd.f32 %v2150_v56, %v3770_v27 }
0x14da   :  { %v2572_v59 = vadd.f32 %v3142_v57, %v4070_v55  ;;  %v2566_v60 = vpop.f32.mrb[17].mxu0 }
0x14db   :  { %v2567_v61 = vadd.f32 %v4070_v55, %v2566_v60  ;;  %2154 = vrot.lane.b32.xlu0 %v2151_v58, %s3576_s27  ;;  %v2152_v20 = vmul.f32 %v2151_v58, %v4025_v5 }
0x14dc   :  { %2606 = vst [vmem:[#allocation15 + $0x1] sm:$0x1] %v2572_v59  ;;  %2614 = vst [vmem:[#allocation15 + $0x8] sm:$0x2] %v2572_v59 }
0x14dd   :  { %2605 = vst [vmem:[#allocation15] sm:$0x1] %v2567_v61  ;;  %2613 = vst [vmem:[#allocation15 + $0x7] sm:$0x2] %v2567_v61  ;;  %v3145_v47 = vpop.f32.mrb[18].mxu0 }
0x14de   :  { %v3400_v62 = vpop.eup %3399  ;;  %v2582_v63 = vadd.f32 %v3145_v47, %v4070_v55  ;;  %v2576_v0 = vpop.f32.mrb[19].mxu0 }
0x14df   :  { %v2577_v1 = vadd.f32 %v4070_v55, %v2576_v0  ;;  %v2334_v2 = vmul.f32 %v3400_v62, %v3768_v25 }
0x14e0   :  { %2608 = vst [vmem:[#allocation15 + $0x3] sm:$0x1] %v2582_v63  ;;  %2616 = vst [vmem:[#allocation15 + $0xa] sm:$0x2] %v2582_v63 }
0x14e1   :  { %2607 = vst [vmem:[#allocation15 + $0x2] sm:$0x1] %v2577_v1  ;;  %2615 = vst [vmem:[#allocation15 + $0x9] sm:$0x2] %v2577_v1  ;;  %v3148_v8 = vpop.f32.mrb[20].mxu0  ;;  %v2335_v9 = vadd.f32 %v2334_v2, %v3770_v27 }
0x14e2   :  { %v2592_v12 = vadd.f32 %v3148_v8, %v4070_v55  ;;  %v2586_v14 = vpop.f32.mrb[21].mxu0 }
0x14e3   :  { %v2587_v15 = vadd.f32 %v4070_v55, %v2586_v14  ;;  %2338 = vrot.lane.b32.xlu1 %v2335_v9, %s3576_s27  ;;  %v2336_v23 = vmul.f32 %v2335_v9, %v4029_v11  ;;  %v3291_v11 = vpack.c.bf16 %v2354_v34, %v2353_v33 }
0x14e4   :  { %2610 = vst [vmem:[#allocation15 + $0x5] sm:$0x1] %v2592_v12  ;;  %2618 = vst [vmem:[#allocation15 + $0xc] sm:$0x2] %v2592_v12 }
0x14e5   :  { %2609 = vst [vmem:[#allocation15 + $0x4] sm:$0x1] %v2587_v15  ;;  %2617 = vst [vmem:[#allocation15 + $0xb] sm:$0x2] %v2587_v15 }
0x154d   :  { %v2155_v16 = vpop.permute.xlu0 %2154 }
0x154e   :  { %v2157_v17 = vmul.f32 %v2155_v16, %v2151_v58 }
0x1550   :  { %2159 = vrot.lane.b32.xlu0 %v2157_v17, %s3577_s29 }
0x1555   :  { %v2339_v18 = vpop.permute.xlu1 %2338 }
0x1556   :  { %v2341_v19 = vmul.f32 %v2339_v18, %v2335_v9 }
0x1558   :  { %2343 = vrot.lane.b32.xlu1 %v2341_v19, %s3577_s29 }
0x15c2   :  { %v2160_v21 = vpop.permute.xlu0 %2159 }
0x15c3   :  { %v2162_v22 = vadd.f32 %v2160_v21, %v2152_v20 }
0x15c5   :  { %3401 = vtanh.f32 %v2162_v22 }
0x15ca   :  { %v2344_v24 = vpop.permute.xlu1 %2343 }
0x15cb   :  { %v2346_v26 = vadd.f32 %v2344_v24, %v2336_v23 }
0x15cd   :  { %3403 = vtanh.f32 %v2346_v26 }
0x15cf   :  { %v3402_v28 = vpop.eup %3401 }
0x15d0   :  { %2165 = vrot.lane.b32.xlu0 %v3402_v28, %s3576_s27 }
0x15d7   :  { %v3404_v29 = vpop.eup %3403 }
0x15d8   :  { %2349 = vrot.lane.b32.xlu1 %v3404_v29, %s3576_s27 }
0x1642   :  { %v2166_v30 = vpop.permute.xlu0 %2165 }
0x1643   :  { %v2168_v31 = vmul.f32 %v2166_v30, %v2151_v58 }
0x1645   :  { %2170 = vrot.lane.b32.xlu0 %v2168_v31, %s3577_s29 }
0x164a   :  { %v2350_v32 = vpop.permute.xlu1 %2349 }
0x164b   :  { %v2352_v5 = vmul.f32 %v2350_v32, %v2335_v9 }
0x164d   :  { %2358 = vrot.lane.b32.xlu1 %v2352_v5, %s3577_s29 }
0x16b7   :  { %v2171_v6 = vpop.permute.xlu0 %2170 }
0x16b8   :  { %2173 = vst.msk [vmem:[#allocation3 + $0x30] sm:$0xff] %vm202_vm4, %v2171_v6  ;;  %3108 = vmatmul.mubr.msk.f32.vlgmr.msra.gmra.mrb[16].mxu1 %vm202_vm4, %v2171_v6 }
0x16b9   :  { %3292 = vmatpush3.bf16.msra.mxu1 %v3291_v11  ;;  %3129 = vmatprep.mubr.msk.f32.mxu1 %vm3573_vm0, %v4049_v36 }
0x16ba   :  { %3293 = vmatprep.subr.bf16.mxu1 %v3572_v3 }
0x16bd   :  { %3295 = vmatpush3.bf16.msra.mxu1 %v3294_v40 }
0x16bf   :  { %v2359_v37 = vpop.permute.xlu1 %2358  ;;  %v2463_v39 = vld [vmem:[#allocation3 + $0x30] sm:$0xff] }
0x16c0   :  { %2622 = vst.msk [vmem:[%s4150_s9] sm:$0xff] %vm202_vm4, %v2359_v37  ;;  %3130 = vmatmul.mubr.msk.f32.vlgmr.msra.gmra.mrb[16].mxu1 %vm202_vm4, %v2359_v37  ;;  %3149 = vmatprep.mubr.msk.f32.mxu0 %vm202_vm4, %v2463_v39 }
0x1793   :  { %v2428_v41 = vpop.f32.mrb[16].mxu1 }
0x1794   :  { %v3312_v4 = vadd.f32 %v4064_v48, %v2428_v41  ;;  %v3131_v42 = vpop.f32.mrb[17].mxu1 }
0x1796   :  { %3405 = vtanh.f32 %v3312_v4 }
0x17a0   :  { %v3406_v36 = vpop.eup %3405 }
0x17a1   :  { %v2433_v3 = vmul.f32 %v3406_v36, %v3768_v25 }
0x17a3   :  { %v2434_v43 = vadd.f32 %v2433_v3, %v3770_v27 }
0x17a5   :  { %2437 = vrot.lane.b32.xlu0 %v2434_v43, %s3576_s27  ;;  %v2435_v46 = vmul.f32 %v2434_v43, %v2162_v22 }
0x1817   :  { %v2438_v44 = vpop.permute.xlu0 %2437 }
0x1818   :  { %v2440_v45 = vmul.f32 %v2438_v44, %v2434_v43 }
0x181a   :  { %2442 = vrot.lane.b32.xlu1 %v2440_v45, %s3577_s29 }
0x188c   :  { %v2443_v7 = vpop.permute.xlu1 %2442 }
0x188d   :  { %v2445_v49 = vadd.f32 %v2443_v7, %v2435_v46 }
0x188f   :  { %3407 = vtanh.f32 %v2445_v49 }
0x1899   :  { %v3408_v10 = vpop.eup %3407 }
0x189a   :  { %2448 = vrot.lane.b32.xlu0 %v3408_v10, %s3576_s27 }
0x189e   :  { %2626 = vrot.lane.b32.xlu0 %v2346_v26, %s3578_s0 }
0x190c   :  { %v2449_v48 = vpop.permute.xlu0 %2448 }
0x190d   :  { %v2451_v50 = vmul.f32 %v2449_v48, %v2434_v43 }
0x190f   :  { %2453 = vrot.lane.b32.xlu1 %v2451_v50, %s3577_s29  ;;  %s3579_s29 = smov [#allocation15]  }
0x1910   :  { %v2627_v25 = vpop.permute.xlu0 %2626  ;;  %s2641_s6 = sshll.u32 %s3579_s29, 4  ;;  %s2642_s6 = int_to_ptr.vmem [resolvable:$true] %s2641_s6 }
0x1911   :  { %2629 = vst.msk [vmem:[%s4151_s10] sm:$0xff] %vm202_vm4, %v2627_v25  ;;  %p3535_p2 = scmp.lt.s32.totalorder %s2642_s6, %s2642_s6 }
0x1913   :  { %2631 = vrot.lane.b32.xlu1 %v2445_v49, %s3578_s0 }
0x1981   :  { %v2454_v27 = vpop.permute.xlu1 %2453 }
0x1982   :  { %2456 = vst.msk [vmem:[#allocation3 + $0x38] sm:$0xff] %vm202_vm4, %v2454_v27  ;;  %2734 = vst.msk [vmem:[%s4150_s9 + $0x8] sm:$0xff] %vm202_vm4, %v2454_v27  ;;  %s3530_s9 = scalar_lea.vmem %s2642_s6, 256 }
0x1983   :  { %p3531_p1 = scmp.ne.s32.totalorder %s2642_s6, %s3530_s9  ;;  %p3536_p3 = scmp.lt.s32.totalorder %s3530_s9, %s3530_s9 }
0x1985   :  { %v2632_v51 = vpop.permute.xlu1 %2631  ;;  %p3537_p4 = por %p3536_p3, %p3535_p2 }
0x1986   :  { %2735 = vst.msk [vmem:[%s4151_s10 + $0x8] sm:$0xff] %vm202_vm4, %v2632_v51 }
0x1987   :  { %p3538_p5 = pnand %p3537_p4, %p3531_p1 }
0x1989   :  { %v2464_v52 = vld [vmem:[#allocation3 + $0x38] sm:$0xff] }
0x198a   :  { %3150 = vmatmul.mubr.msk.f32.gmra.mrb[22].mxu0 %vm202_vm4, %v2464_v52 }
0x1a5d   :  { %v3151_v13 = vpop.f32.mrb[22].mxu0 }
0x1a5e   :  { %v2602_v53 = vadd.f32 %v3151_v13, %v4070_v55  ;;  %v2596_v54 = vpop.f32.mrb[23].mxu0 }
0x1a5f   :  { %v2597_v56 = vadd.f32 %v4070_v55, %v2596_v54 }
0x1a60   :  { %2612 = vst [vmem:[#allocation15 + $0x7] sm:$0x1] %v2602_v53  ;;  %2620 = vst [vmem:[#allocation15 + $0xe] sm:$0x2] %v2602_v53 }
0x1a61   :  { %2611 = vst [vmem:[#allocation15 + $0x6] sm:$0x1] %v2597_v56  ;;  %2619 = vst [vmem:[#allocation15 + $0xd] sm:$0x2] %v2597_v56 }
0x1a62   :  { %3541 = shalt.err (!%p3538_p5)
}
0x1a63   :  { %s3542_s25 = scalar_lea.hbm %s4149_s8, 256 }
0x1a64   :  { %p3543_p6 = scmp.ne.s32.totalorder %s4149_s8, %s3542_s25  ;;  %p3546_p7 = scmp.lt.u32.totalorder %s3542_s25, %s4149_s8 }
0x1a66   :  { %p3548_p8 = pnand %p3546_p7, %p3543_p6 }
0x1a68   :  { %3551 = shalt.err (!%p3548_p8)
}
0x1a69   :  { %2647 = dma.vmem_to_hbm [thread:$0]  %s2642_s6, 256, %s4149_s8, [#allocation6], %s3563_s23, %s3563_s23, %s3564_s24  }
0x1a6a   :  { %3560 = dma.done.wait [#allocation6], 256  }
0x1a6b   :  { %3561 = vsyncadd [#allocation6], 4294967040 }
0x1a6c   :  { %2659 = vsyncpa [#allocation5], 1 }
0x1a6d   :  { %2660 = vsyncpa [#allocation10], 1 }
0x1a6e   :  { %2661 = vsyncpa [#allocation13], 1 }
0x1a6f   :  { %2662 = vsyncpa [#allocation6], 1 }
0x1a70   :  { %2663 = vsyncpa [#allocation7], 1 }

</bundles_post_ra>
